<compile_context>
chip_gen: v5e
topology: v5e:2x2
jax: 0.10.0
libtpu: 0.0.40
codegen_flags: <defaults>
</compile_context>

<pallas_src>
import functools
import math

import jax
import jax.numpy as jnp
from jax.experimental import pallas as pl
from jax.experimental.pallas import tpu as pltpu

EPS = 1e-5
_SMALL_K = 32    # contraction depth at/below which the VPU path is used.
                 # TODO(synk): drop to ~16 on v5e (128-deep MXU) per review.
_NPHASE = 4


def _ch_matmul(w, h):
    """Channel contraction w [Co, Ci] @ h [Ci, M] -> [Co, M] (f32).

    For tiny Ci the MXU would be ~97% padding, so do Ci broadcast
    multiply-adds on the VPU; larger Ci falls back to the MXU.
    """
    ci = w.shape[1]
    if ci <= _SMALL_K:
        acc = w[:, 0:1] * h[0:1, :]
        for c in range(1, ci):
            acc = acc + w[:, c:c + 1] * h[c:c + 1, :]
        return acc
    return jnp.dot(w, h, preferred_element_type=jnp.float32)


def _bytes_per_column(c0, c1, c2):
    # Rough f32 live bytes per flattened column inside one tile: double-
    # buffered x/out tiles + h / rolled-h / y / z / r intermediates + slack.
    return 4 * (2 * c0 + 2 * c2 + 10 * max(c1, c2) + 8)


def _pick_m_tile(m, seq_len, c0, c1, c2):
    """Largest sample-aligned, 128-lane-aligned tile that divides M and fits
    a ~8 MiB per-tile working-set budget; falls back to the whole axis."""
    budget = 8 << 20
    target = max(512, budget // _bytes_per_column(c0, c1, c2))
    if m <= target:
        return m
    # lcm(L, 128): tiles cover whole samples (k=3 halo never crosses a tile)
    # and are lane-aligned (unmasked stores).
    step = (seq_len * 128) // math.gcd(seq_len, 128)
    best, t = m, step
    while t <= target:
        if m % t == 0:
            best = t
        t += step
    # TODO(synk): if no aligned divisor exists the whole axis stays resident;
    # a ragged last tile would need masking of the BN partial sums.
    return best


def _post_res_bottleneck_kernel(x_ref, w1_ref, w2_ref, w3_ref, ws_ref, bn_ref,
                                out_ref, s1_ref, s2_ref, s3_ref, ss_ref,
                                *, seq_len, total_m):
    phase = pl.program_id(0)
    mt = pl.program_id(1)
    tm = x_ref.shape[1]
    inv_m = 1.0 / float(total_m)

    # Zero the persistent stats scratch once, at the very first grid step.
    @pl.when((phase == 0) & (mt == 0))
    def _():
        s1_ref[...] = jnp.zeros_like(s1_ref)
        s2_ref[...] = jnp.zeros_like(s2_ref)
        s3_ref[...] = jnp.zeros_like(s3_ref)
        ss_ref[...] = jnp.zeros_like(ss_ref)

    x = x_ref[...].astype(jnp.float32)      # [C0, TM] lane-dense tile
    bnp = bn_ref[...]                       # [Cmax, 8] packed gamma/beta

    # conv2 edge masks, generated in-kernel (tiles are sample-aligned, so the
    # local column index mod L equals the per-sample position).
    col = jax.lax.broadcasted_iota(jnp.int32, (1, tm), 1) % seq_len
    mask_prev = (col != 0).astype(jnp.float32)            # h[l-1] invalid at l==0
    mask_next = (col != seq_len - 1).astype(jnp.float32)  # h[l+1] invalid at l==L-1

    def accumulate(ref, t):
        # sum and sum-of-squares partials for one BN layer (single sweep).
        s = jnp.sum(t, axis=1, keepdims=True)
        q = jnp.sum(t * t, axis=1, keepdims=True)
        ref[...] = ref[...] + jnp.concatenate([s, q], axis=1)

    def affine(ref, col0):
        # Train-mode BatchNorm1d folded to h*a + b (biased var, eps=1e-5).
        c = ref.shape[0]
        st = ref[...]
        mean = st[:, 0:1] * inv_m
        var = st[:, 1:2] * inv_m - mean * mean
        a = bnp[:c, col0:col0 + 1] * jax.lax.rsqrt(var + EPS)
        b = bnp[:c, col0 + 1:col0 + 2] - mean * a
        return a, b

    def conv1():
        return _ch_matmul(w1_ref[...].astype(jnp.float32), x)

    def shortcut():
        return _ch_matmul(ws_ref[...].astype(jnp.float32), x)

    def stage1():                               # conv1 -> bn1 -> relu
        a, b = affine(s1_ref, 0)
        return jnp.maximum(conv1() * a + b, 0.0)

    def conv2(h):                               # k=3, pad=1, stride=1
        w2 = w2_ref[...].astype(jnp.float32)    # [3, C1, C1] tight taps
        h_prev = pltpu.roll(h, shift=1, axis=1) * mask_prev
        h_next = pltpu.roll(h, shift=tm - 1, axis=1) * mask_next
        return (_ch_matmul(w2[0], h_prev) + _ch_matmul(w2[1], h)
                + _ch_matmul(w2[2], h_next))

    def stage2():                               # ... -> conv2 -> bn2 -> relu
        a, b = affine(s2_ref, 2)
        return jnp.maximum(conv2(stage1()) * a + b, 0.0)

    def conv3(y):
        return _ch_matmul(w3_ref[...].astype(jnp.float32), y)

    @pl.when(phase == 0)          # stats for bn1 and the shortcut bn
    def _():
        accumulate(s1_ref, conv1())
        accumulate(ss_ref, shortcut())

    @pl.when(phase == 1)          # stats for bn2
    def _():
        accumulate(s2_ref, conv2(stage1()))

    @pl.when(phase == 2)          # stats for bn3
    def _():
        accumulate(s3_ref, conv3(stage2()))

    @pl.when(phase == 3)          # normalize + residual add + relu, write out
    def _():
        a3, b3 = affine(s3_ref, 4)
        ash, bsh = affine(ss_ref, 6)
        z = conv3(stage2()) * a3 + b3
        r = shortcut() * ash + bsh
        out_ref[...] = jnp.maximum(z + r, 0.0).astype(out_ref.dtype)


def post_res_bottleneck(x_ncl, kp):
    """x_ncl: [N, C0, L] (PyTorch NCL). Returns [N, C2, L]."""
    n, c0, seq_len = x_ncl.shape
    c1 = kp['w1'].shape[0]
    c2 = kp['w3'].shape[0]
    m = n * seq_len

    # Lane-dense channel-major layout for the kernel (repack done by XLA).
    x2 = jnp.transpose(x_ncl, (1, 0, 2)).reshape(c0, m)

    tm = _pick_m_tile(m, seq_len, c0, c1, c2)
    nt = m // tm
    vmem_limit = int(min(64 << 20,
                         max(16 << 20, 4 * tm * _bytes_per_column(c0, c1, c2))))

    grid_spec = pltpu.PrefetchScalarGridSpec(
        num_scalar_prefetch=0,
        grid=(_NPHASE, nt),
        in_specs=[
            pl.BlockSpec((c0, tm), lambda p, t: (0, t)),
            pl.BlockSpec(kp['w1'].shape, lambda p, t: (0, 0)),
            pl.BlockSpec(kp['w2'].shape, lambda p, t: (0, 0, 0)),
            pl.BlockSpec(kp['w3'].shape, lambda p, t: (0, 0)),
            pl.BlockSpec(kp['ws'].shape, lambda p, t: (0, 0)),
            pl.BlockSpec(kp['bn'].shape, lambda p, t: (0, 0)),
        ],
        # Output tiles are produced only in the last phase; earlier phases
        # stay parked on block 0 so no garbage tiles are written back.
        out_specs=pl.BlockSpec(
            (c2, tm), lambda p, t: (0, jnp.where(p == _NPHASE - 1, t, 0))),
        scratch_shapes=[pltpu.VMEM((c1, 2), jnp.float32),   # bn1 sum/sumsq
                        pltpu.VMEM((c1, 2), jnp.float32),   # bn2 sum/sumsq
                        pltpu.VMEM((c2, 2), jnp.float32),   # bn3 sum/sumsq
                        pltpu.VMEM((c2, 2), jnp.float32)],  # shortcut bn
    )
    out2 = pl.pallas_call(
        functools.partial(_post_res_bottleneck_kernel,
                          seq_len=seq_len, total_m=m),
        out_shape=jax.ShapeDtypeStruct((c2, m), x_ncl.dtype),
        grid_spec=grid_spec,
        compiler_params=pltpu.CompilerParams(
            # m-tile axis must stay sequential: BN stats accumulate into one
            # VMEM scratch that lives across grid iterations.
            dimension_semantics=("arbitrary", "arbitrary"),
            vmem_limit_bytes=vmem_limit),
    )(x2, kp['w1'], kp['w2'], kp['w3'], kp['ws'], kp['bn'])

    return jnp.transpose(out2.reshape(c2, n, seq_len), (1, 0, 2))


# --------------------------------------------------------------------------
# Pure-JAX reference using lax.conv with PyTorch-format weights (for checking)
# --------------------------------------------------------------------------
def torch_like_reference(x, pt):
    def conv1d(v, w, b, padding=0):
        y = jax.lax.conv_general_dilated(
            v, w, window_strides=(1,), padding=[(padding, padding)],
            dimension_numbers=('NCH', 'OIH', 'NCH'))
        return y + b[None, :, None]

    def bn(h, g, be):
        mean = jnp.mean(h, axis=(0, 2), keepdims=True)
        var = jnp.mean((h - mean) ** 2, axis=(0, 2), keepdims=True)
        return (h - mean) / jnp.sqrt(var + EPS) * g[None, :, None] + be[None, :, None]

    relu = lambda v: jnp.maximum(v, 0.0)
    r = bn(conv1d(x, pt['ws'], pt['bs']), pt['gs'], pt['bes'])
    h = relu(bn(conv1d(x, pt['w1'], pt['b1']), pt['g1'], pt['be1']))
    h = relu(bn(conv1d(h, pt['w2'], pt['b2'], padding=1), pt['g2'], pt['be2']))
    h = bn(conv1d(h, pt['w3'], pt['b3']), pt['g3'], pt['be3'])
    return relu(h + r)


def make_params(key, c0, c1, c2):
    """PyTorch-layout params (for the reference) + packed kernel params."""
    ks = jax.random.split(key, 8)
    pt = {
        'w1': 0.2 * jax.random.normal(ks[0], (c1, c0, 1), jnp.float32),
        'b1': 0.1 * jax.random.normal(ks[1], (c1,), jnp.float32),
        'w2': 0.2 * jax.random.normal(ks[2], (c1, c1, 3), jnp.float32),
        'b2': 0.1 * jax.random.normal(ks[3], (c1,), jnp.float32),
        'w3': 0.2 * jax.random.normal(ks[4], (c2, c1, 1), jnp.float32),
        'b3': 0.1 * jax.random.normal(ks[5], (c2,), jnp.float32),
        'ws': 0.2 * jax.random.normal(ks[6], (c2, c0, 1), jnp.float32),
        'bs': 0.1 * jax.random.normal(ks[7], (c2,), jnp.float32),
        # BatchNorm1d default init: gamma=1, beta=0
        'g1': jnp.ones((c1,)), 'be1': jnp.zeros((c1,)),
        'g2': jnp.ones((c1,)), 'be2': jnp.zeros((c1,)),
        'g3': jnp.ones((c2,)), 'be3': jnp.zeros((c2,)),
        'gs': jnp.ones((c2,)), 'bes': jnp.zeros((c2,)),
    }

    # Tight (unpadded) kernel weights: k=1 convs as [Co, Ci], k=3 conv as
    # [3, C1, C1] taps.  Conv biases are intentionally NOT packed: they are
    # mathematically dead under train-mode BatchNorm (mean subtraction).
    w1 = pt['w1'][:, :, 0]
    w2 = jnp.transpose(pt['w2'], (2, 0, 1))
    w3 = pt['w3'][:, :, 0]
    ws = pt['ws'][:, :, 0]
    # Packed BN affine params: columns g1,be1,g2,be2,g3,be3,gs,bes.
    cmax = max(c1, c2)
    bn = jnp.zeros((cmax, 8), jnp.float32)
    for j, (name, cc) in enumerate([('g1', c1), ('be1', c1), ('g2', c1),
                                    ('be2', c1), ('g3', c2), ('be3', c2),
                                    ('gs', c2), ('bes', c2)]):
        bn = bn.at[:cc, j].set(pt[name])
    kp = {'w1': w1, 'w2': w2, 'w3': w3, 'ws': ws, 'bn': bn}
    return pt, kp


if __name__ == "__main__":
    # n_channel = [4, 4, 8], stride=1  -> shortcut branch exists (c0 == c1)
    N, L = 2, 16
    C0, C1, C2 = 4, 4, 8

    key = jax.random.PRNGKey(0)
    kx, kw = jax.random.split(key)
    x = jax.random.normal(kx, (N, C0, L), jnp.float32)   # PyTorch NCL input

    pt_params, k_params = make_params(kw, C0, C1, C2)

    out = post_res_bottleneck(x, k_params)
    out = jax.block_until_ready(out)

    ref = torch_like_reference(x, pt_params)
    assert out.shape == (N, C2, L), out.shape
    assert jnp.allclose(out, ref, atol=2e-4, rtol=2e-4), (
        float(jnp.max(jnp.abs(out - ref))))

    print("KERNEL_OK")
</pallas_src>

<mosaic_0001>
module attributes {stable_mosaic.version = 11 : i64} {
  func.func @_post_res_bottleneck_kernel(%arg0: i32, %arg1: i32, %arg2: memref<4x32xf32, #tpu.memory_space<vmem>>, %arg3: memref<4x4xf32, #tpu.memory_space<vmem>>, %arg4: memref<3x4x4xf32, #tpu.memory_space<vmem>>, %arg5: memref<8x4xf32, #tpu.memory_space<vmem>>, %arg6: memref<8x4xf32, #tpu.memory_space<vmem>>, %arg7: memref<8x8xf32, #tpu.memory_space<vmem>>, %arg8: memref<8x32xf32, #tpu.memory_space<vmem>>, %arg9: memref<4x2xf32, #tpu.memory_space<vmem>>, %arg10: memref<4x2xf32, #tpu.memory_space<vmem>>, %arg11: memref<8x2xf32, #tpu.memory_space<vmem>>, %arg12: memref<8x2xf32, #tpu.memory_space<vmem>>) attributes {dimension_semantics = [#tpu.dimension_semantics<arbitrary>, #tpu.dimension_semantics<arbitrary>], iteration_bounds = array<i64: 4, 1>, scalar_prefetch = 0 : i64, scratch_operands = 4 : i64, tpu.core_type = #tpu.core_type<tc>, window_params = [{transform_indices = @transform_0, window_bounds = array<i64: 4, 32>}, {pipeline_mode = #tpu.pipeline_mode<synchronous>, transform_indices = @transform_1, window_bounds = array<i64: 4, 4>}, {pipeline_mode = #tpu.pipeline_mode<synchronous>, transform_indices = @transform_2, window_bounds = array<i64: 3, 4, 4>}, {pipeline_mode = #tpu.pipeline_mode<synchronous>, transform_indices = @transform_3, window_bounds = array<i64: 8, 4>}, {pipeline_mode = #tpu.pipeline_mode<synchronous>, transform_indices = @transform_4, window_bounds = array<i64: 8, 4>}, {pipeline_mode = #tpu.pipeline_mode<synchronous>, transform_indices = @transform_5, window_bounds = array<i64: 8, 8>}, {transform_indices = @transform_6, window_bounds = array<i64: 8, 32>}]} {
    %c0_i32 = arith.constant 0 : i32
    %0 = arith.cmpi eq, %arg0, %c0_i32 : i32
    %c0_i32_0 = arith.constant 0 : i32
    %1 = arith.cmpi eq, %arg1, %c0_i32_0 : i32
    %2 = arith.andi %0, %1 : i1
    %3 = arith.extui %2 : i1 to i32
    %c0_i32_1 = arith.constant 0 : i32
    %4 = arith.cmpi ne, %3, %c0_i32_1 : i32
    scf.if %4 {
      %cst = arith.constant 0.000000e+00 : f32
      %44 = vector.broadcast %cst : f32 to vector<4x2xf32>
      %c0_16 = arith.constant 0 : index
      %c0_17 = arith.constant 0 : index
      %45 = vector.load %arg9[%c0_16, %c0_17] : memref<4x2xf32, #tpu.memory_space<vmem>>, vector<4x2xf32>
      tpu.vector_store %arg9[%c0_16, %c0_17], %44 {strides = array<i32>} : memref<4x2xf32, #tpu.memory_space<vmem>>, vector<4x2xf32>,
      %cst_18 = arith.constant 0.000000e+00 : f32
      %46 = vector.broadcast %cst_18 : f32 to vector<4x2xf32>
      %c0_19 = arith.constant 0 : index
      %c0_20 = arith.constant 0 : index
      %47 = vector.load %arg10[%c0_19, %c0_20] : memref<4x2xf32, #tpu.memory_space<vmem>>, vector<4x2xf32>
      tpu.vector_store %arg10[%c0_19, %c0_20], %46 {strides = array<i32>} : memref<4x2xf32, #tpu.memory_space<vmem>>, vector<4x2xf32>,
      %cst_21 = arith.constant 0.000000e+00 : f32
      %48 = vector.broadcast %cst_21 : f32 to vector<8x2xf32>
      %c0_22 = arith.constant 0 : index
      %c0_23 = arith.constant 0 : index
      %49 = vector.load %arg11[%c0_22, %c0_23] : memref<8x2xf32, #tpu.memory_space<vmem>>, vector<8x2xf32>
      tpu.vector_store %arg11[%c0_22, %c0_23], %48 {strides = array<i32>} : memref<8x2xf32, #tpu.memory_space<vmem>>, vector<8x2xf32>,
      %cst_24 = arith.constant 0.000000e+00 : f32
      %50 = vector.broadcast %cst_24 : f32 to vector<8x2xf32>
      %c0_25 = arith.constant 0 : index
      %c0_26 = arith.constant 0 : index
      %51 = vector.load %arg12[%c0_25, %c0_26] : memref<8x2xf32, #tpu.memory_space<vmem>>, vector<8x2xf32>
      tpu.vector_store %arg12[%c0_25, %c0_26], %50 {strides = array<i32>} : memref<8x2xf32, #tpu.memory_space<vmem>>, vector<8x2xf32>,
    } else {
    }
    %c0 = arith.constant 0 : index
    %c0_2 = arith.constant 0 : index
    %5 = vector.load %arg2[%c0, %c0_2] : memref<4x32xf32, #tpu.memory_space<vmem>>, vector<4x32xf32>
    %c0_3 = arith.constant 0 : index
    %c0_4 = arith.constant 0 : index
    %6 = vector.load %arg7[%c0_3, %c0_4] : memref<8x8xf32, #tpu.memory_space<vmem>>, vector<8x8xf32>
    %7 = tpu.iota {dimensions = array<i32: 1>} : vector<1x32xi32>
    %c16_i32 = arith.constant 16 : i32
    %c0_i32_5 = arith.constant 0 : i32
    %8 = arith.cmpi eq, %c16_i32, %c0_i32_5 : i32
    %c1_i32 = arith.constant 1 : i32
    %9 = arith.select %8, %c1_i32, %c16_i32 : i32
    %10 = vector.broadcast %9 : i32 to vector<1x32xi32>
    %11 = arith.remsi %7, %10 : vector<1x32xi32>
    %c0_i32_6 = arith.constant 0 : i32
    %12 = vector.broadcast %c0_i32_6 : i32 to vector<1x32xi32>
    %13 = arith.cmpi ne, %11, %12 : vector<1x32xi32>
    %c0_i32_7 = arith.constant 0 : i32
    %14 = vector.broadcast %c0_i32_7 : i32 to vector<1x32xi32>
    %15 = arith.cmpi slt, %11, %14 : vector<1x32xi32>
    %c0_i32_8 = arith.constant 0 : i32
    %16 = arith.cmpi slt, %9, %c0_i32_8 : i32
    %17 = vector.broadcast %16 : i1 to vector<1x32xi1>
    %18 = vector.broadcast %17 : vector<1x32xi1> to vector<1x32xi1>
    %19 = arith.xori %15, %18 : vector<1x32xi1>
    %20 = arith.andi %19, %13 : vector<1x32xi1>
    %21 = vector.broadcast %9 : i32 to vector<1x32xi32>
    %22 = arith.addi %11, %21 : vector<1x32xi32>
    %23 = arith.select %20, %22, %11 : vector<1x32xi1>, vector<1x32xi32>
    %c0_i32_9 = arith.constant 0 : i32
    %24 = vector.broadcast %c0_i32_9 : i32 to vector<1x32xi32>
    %25 = arith.cmpi ne, %23, %24 : vector<1x32xi32>
    %26 = arith.extui %25 : vector<1x32xi1> to vector<1x32xi32>
    %27 = arith.sitofp %26 : vector<1x32xi32> to vector<1x32xf32>
    %c15_i32 = arith.constant 15 : i32
    %28 = vector.broadcast %c15_i32 : i32 to vector<1x32xi32>
    %29 = arith.cmpi ne, %23, %28 : vector<1x32xi32>
    %30 = arith.extui %29 : vector<1x32xi1> to vector<1x32xi32>
    %31 = arith.sitofp %30 : vector<1x32xi32> to vector<1x32xf32>
    %c0_i32_10 = arith.constant 0 : i32
    %32 = arith.cmpi eq, %arg0, %c0_i32_10 : i32
    %33 = arith.extui %32 : i1 to i32
    %c0_i32_11 = arith.constant 0 : i32
    %34 = arith.cmpi ne, %33, %c0_i32_11 : i32
    scf.if %34 {
      %c0_16 = arith.constant 0 : index
      %c0_17 = arith.constant 0 : index
      %44 = vector.load %arg3[%c0_16, %c0_17] : memref<4x4xf32, #tpu.memory_space<vmem>>, vector<4x4xf32>
      %45 = vector.extract_strided_slice %44 {offsets = [0, 0], sizes = [4, 1], strides = [1, 1]} : vector<4x4xf32> to vector<4x1xf32>
      %46 = vector.extract_strided_slice %5 {offsets = [0, 0], sizes = [1, 32], strides = [1, 1]} : vector<4x32xf32> to vector<1x32xf32>
      %47 = vector.broadcast %45 : vector<4x1xf32> to vector<4x32xf32>
      %48 = vector.broadcast %46 : vector<1x32xf32> to vector<4x32xf32>
      %49 = arith.mulf %47, %48 : vector<4x32xf32>
      %50 = vector.extract_strided_slice %44 {offsets = [0, 1], sizes = [4, 1], strides = [1, 1]} : vector<4x4xf32> to vector<4x1xf32>
      %51 = vector.extract_strided_slice %5 {offsets = [1, 0], sizes = [1, 32], strides = [1, 1]} : vector<4x32xf32> to vector<1x32xf32>
      %52 = vector.broadcast %50 : vector<4x1xf32> to vector<4x32xf32>
      %53 = vector.broadcast %51 : vector<1x32xf32> to vector<4x32xf32>
      %54 = arith.mulf %52, %53 : vector<4x32xf32>
      %55 = arith.addf %49, %54 : vector<4x32xf32>
      %56 = vector.extract_strided_slice %44 {offsets = [0, 2], sizes = [4, 1], strides = [1, 1]} : vector<4x4xf32> to vector<4x1xf32>
      %57 = vector.extract_strided_slice %5 {offsets = [2, 0], sizes = [1, 32], strides = [1, 1]} : vector<4x32xf32> to vector<1x32xf32>
      %58 = vector.broadcast %56 : vector<4x1xf32> to vector<4x32xf32>
      %59 = vector.broadcast %57 : vector<1x32xf32> to vector<4x32xf32>
      %60 = arith.mulf %58, %59 : vector<4x32xf32>
      %61 = arith.addf %55, %60 : vector<4x32xf32>
      %62 = vector.extract_strided_slice %44 {offsets = [0, 3], sizes = [4, 1], strides = [1, 1]} : vector<4x4xf32> to vector<4x1xf32>
      %63 = vector.extract_strided_slice %5 {offsets = [3, 0], sizes = [1, 32], strides = [1, 1]} : vector<4x32xf32> to vector<1x32xf32>
      %64 = vector.broadcast %62 : vector<4x1xf32> to vector<4x32xf32>
      %65 = vector.broadcast %63 : vector<1x32xf32> to vector<4x32xf32>
      %66 = arith.mulf %64, %65 : vector<4x32xf32>
      %67 = arith.addf %61, %66 : vector<4x32xf32>
      %cst = arith.constant dense<0.000000e+00> : vector<4xf32>
      %68 = vector.multi_reduction <add>, %67, %cst [1] : vector<4x32xf32> to vector<4xf32>
      %69 = vector.shape_cast %68 : vector<4xf32> to vector<4x1xf32>
      %70 = arith.mulf %67, %67 : vector<4x32xf32>
      %cst_18 = arith.constant dense<0.000000e+00> : vector<4xf32>
      %71 = vector.multi_reduction <add>, %70, %cst_18 [1] : vector<4x32xf32> to vector<4xf32>
      %72 = vector.shape_cast %71 : vector<4xf32> to vector<4x1xf32>
      %c0_19 = arith.constant 0 : index
      %c0_20 = arith.constant 0 : index
      %73 = vector.load %arg9[%c0_19, %c0_20] : memref<4x2xf32, #tpu.memory_space<vmem>>, vector<4x2xf32>
      %74 = tpu.concatenate %69, %72 in 1 : vector<4x1xf32>, vector<4x1xf32> -> vector<4x2xf32>
      %75 = arith.addf %73, %74 : vector<4x2xf32>
      %c0_21 = arith.constant 0 : index
      %c0_22 = arith.constant 0 : index
      %76 = vector.load %arg9[%c0_21, %c0_22] : memref<4x2xf32, #tpu.memory_space<vmem>>, vector<4x2xf32>
      tpu.vector_store %arg9[%c0_21, %c0_22], %75 {strides = array<i32>} : memref<4x2xf32, #tpu.memory_space<vmem>>, vector<4x2xf32>,
      %c0_23 = arith.constant 0 : index
      %c0_24 = arith.constant 0 : index
      %77 = vector.load %arg6[%c0_23, %c0_24] : memref<8x4xf32, #tpu.memory_space<vmem>>, vector<8x4xf32>
      %78 = vector.extract_strided_slice %77 {offsets = [0, 0], sizes = [8, 1], strides = [1, 1]} : vector<8x4xf32> to vector<8x1xf32>
      %79 = vector.extract_strided_slice %5 {offsets = [0, 0], sizes = [1, 32], strides = [1, 1]} : vector<4x32xf32> to vector<1x32xf32>
      %80 = vector.broadcast %78 : vector<8x1xf32> to vector<8x32xf32>
      %81 = vector.broadcast %79 : vector<1x32xf32> to vector<8x32xf32>
      %82 = arith.mulf %80, %81 : vector<8x32xf32>
      %83 = vector.extract_strided_slice %77 {offsets = [0, 1], sizes = [8, 1], strides = [1, 1]} : vector<8x4xf32> to vector<8x1xf32>
      %84 = vector.extract_strided_slice %5 {offsets = [1, 0], sizes = [1, 32], strides = [1, 1]} : vector<4x32xf32> to vector<1x32xf32>
      %85 = vector.broadcast %83 : vector<8x1xf32> to vector<8x32xf32>
      %86 = vector.broadcast %84 : vector<1x32xf32> to vector<8x32xf32>
      %87 = arith.mulf %85, %86 : vector<8x32xf32>
      %88 = arith.addf %82, %87 : vector<8x32xf32>
      %89 = vector.extract_strided_slice %77 {offsets = [0, 2], sizes = [8, 1], strides = [1, 1]} : vector<8x4xf32> to vector<8x1xf32>
      %90 = vector.extract_strided_slice %5 {offsets = [2, 0], sizes = [1, 32], strides = [1, 1]} : vector<4x32xf32> to vector<1x32xf32>
      %91 = vector.broadcast %89 : vector<8x1xf32> to vector<8x32xf32>
      %92 = vector.broadcast %90 : vector<1x32xf32> to vector<8x32xf32>
      %93 = arith.mulf %91, %92 : vector<8x32xf32>
      %94 = arith.addf %88, %93 : vector<8x32xf32>
      %95 = vector.extract_strided_slice %77 {offsets = [0, 3], sizes = [8, 1], strides = [1, 1]} : vector<8x4xf32> to vector<8x1xf32>
      %96 = vector.extract_strided_slice %5 {offsets = [3, 0], sizes = [1, 32], strides = [1, 1]} : vector<4x32xf32> to vector<1x32xf32>
      %97 = vector.broadcast %95 : vector<8x1xf32> to vector<8x32xf32>
      %98 = vector.broadcast %96 : vector<1x32xf32> to vector<8x32xf32>
      %99 = arith.mulf %97, %98 : vector<8x32xf32>
      %100 = arith.addf %94, %99 : vector<8x32xf32>
      %cst_25 = arith.constant dense<0.000000e+00> : vector<8xf32>
      %101 = vector.multi_reduction <add>, %100, %cst_25 [1] : vector<8x32xf32> to vector<8xf32>
      %102 = vector.shape_cast %101 : vector<8xf32> to vector<8x1xf32>
      %103 = arith.mulf %100, %100 : vector<8x32xf32>
      %cst_26 = arith.constant dense<0.000000e+00> : vector<8xf32>
      %104 = vector.multi_reduction <add>, %103, %cst_26 [1] : vector<8x32xf32> to vector<8xf32>
      %105 = vector.shape_cast %104 : vector<8xf32> to vector<8x1xf32>
      %c0_27 = arith.constant 0 : index
      %c0_28 = arith.constant 0 : index
      %106 = vector.load %arg12[%c0_27, %c0_28] : memref<8x2xf32, #tpu.memory_space<vmem>>, vector<8x2xf32>
      %107 = tpu.concatenate %102, %105 in 1 : vector<8x1xf32>, vector<8x1xf32> -> vector<8x2xf32>
      %108 = arith.addf %106, %107 : vector<8x2xf32>
      %c0_29 = arith.constant 0 : index
      %c0_30 = arith.constant 0 : index
      %109 = vector.load %arg12[%c0_29, %c0_30] : memref<8x2xf32, #tpu.memory_space<vmem>>, vector<8x2xf32>
      tpu.vector_store %arg12[%c0_29, %c0_30], %108 {strides = array<i32>} : memref<8x2xf32, #tpu.memory_space<vmem>>, vector<8x2xf32>,
    } else {
    }
    %c1_i32_12 = arith.constant 1 : i32
    %35 = arith.cmpi eq, %arg0, %c1_i32_12 : i32
    %36 = arith.extui %35 : i1 to i32
    %c0_i32_13 = arith.constant 0 : i32
    %37 = arith.cmpi ne, %36, %c0_i32_13 : i32
    scf.if %37 {
      %c0_16 = arith.constant 0 : index
      %c0_17 = arith.constant 0 : index
      %44 = vector.load %arg9[%c0_16, %c0_17] : memref<4x2xf32, #tpu.memory_space<vmem>>, vector<4x2xf32>
      %45 = vector.extract_strided_slice %44 {offsets = [0, 0], sizes = [4, 1], strides = [1, 1]} : vector<4x2xf32> to vector<4x1xf32>
      %cst = arith.constant 3.125000e-02 : f32
      %46 = vector.broadcast %cst : f32 to vector<4x1xf32>
      %47 = arith.mulf %45, %46 : vector<4x1xf32>
      %48 = vector.extract_strided_slice %44 {offsets = [0, 1], sizes = [4, 1], strides = [1, 1]} : vector<4x2xf32> to vector<4x1xf32>
      %cst_18 = arith.constant 3.125000e-02 : f32
      %49 = vector.broadcast %cst_18 : f32 to vector<4x1xf32>
      %50 = arith.mulf %48, %49 : vector<4x1xf32>
      %51 = arith.mulf %47, %47 : vector<4x1xf32>
      %52 = arith.subf %50, %51 : vector<4x1xf32>
      %53 = vector.extract_strided_slice %6 {offsets = [0, 0], sizes = [4, 1], strides = [1, 1]} : vector<8x8xf32> to vector<4x1xf32>
      %cst_19 = arith.constant 9.99999974E-6 : f32
      %54 = vector.broadcast %cst_19 : f32 to vector<4x1xf32>
      %55 = arith.addf %52, %54 : vector<4x1xf32>
      %56 = math.rsqrt %55 : vector<4x1xf32>
      %57 = arith.mulf %53, %56 : vector<4x1xf32>
      %58 = vector.extract_strided_slice %6 {offsets = [0, 1], sizes = [4, 1], strides = [1, 1]} : vector<8x8xf32> to vector<4x1xf32>
      %59 = arith.mulf %47, %57 : vector<4x1xf32>
      %60 = arith.subf %58, %59 : vector<4x1xf32>
      %c0_20 = arith.constant 0 : index
      %c0_21 = arith.constant 0 : index
      %61 = vector.load %arg3[%c0_20, %c0_21] : memref<4x4xf32, #tpu.memory_space<vmem>>, vector<4x4xf32>
      %62 = vector.extract_strided_slice %61 {offsets = [0, 0], sizes = [4, 1], strides = [1, 1]} : vector<4x4xf32> to vector<4x1xf32>
      %63 = vector.extract_strided_slice %5 {offsets = [0, 0], sizes = [1, 32], strides = [1, 1]} : vector<4x32xf32> to vector<1x32xf32>
      %64 = vector.broadcast %62 : vector<4x1xf32> to vector<4x32xf32>
      %65 = vector.broadcast %63 : vector<1x32xf32> to vector<4x32xf32>
      %66 = arith.mulf %64, %65 : vector<4x32xf32>
      %67 = vector.extract_strided_slice %61 {offsets = [0, 1], sizes = [4, 1], strides = [1, 1]} : vector<4x4xf32> to vector<4x1xf32>
      %68 = vector.extract_strided_slice %5 {offsets = [1, 0], sizes = [1, 32], strides = [1, 1]} : vector<4x32xf32> to vector<1x32xf32>
      %69 = vector.broadcast %67 : vector<4x1xf32> to vector<4x32xf32>
      %70 = vector.broadcast %68 : vector<1x32xf32> to vector<4x32xf32>
      %71 = arith.mulf %69, %70 : vector<4x32xf32>
      %72 = arith.addf %66, %71 : vector<4x32xf32>
      %73 = vector.extract_strided_slice %61 {offsets = [0, 2], sizes = [4, 1], strides = [1, 1]} : vector<4x4xf32> to vector<4x1xf32>
      %74 = vector.extract_strided_slice %5 {offsets = [2, 0], sizes = [1, 32], strides = [1, 1]} : vector<4x32xf32> to vector<1x32xf32>
      %75 = vector.broadcast %73 : vector<4x1xf32> to vector<4x32xf32>
      %76 = vector.broadcast %74 : vector<1x32xf32> to vector<4x32xf32>
      %77 = arith.mulf %75, %76 : vector<4x32xf32>
      %78 = arith.addf %72, %77 : vector<4x32xf32>
      %79 = vector.extract_strided_slice %61 {offsets = [0, 3], sizes = [4, 1], strides = [1, 1]} : vector<4x4xf32> to vector<4x1xf32>
      %80 = vector.extract_strided_slice %5 {offsets = [3, 0], sizes = [1, 32], strides = [1, 1]} : vector<4x32xf32> to vector<1x32xf32>
      %81 = vector.broadcast %79 : vector<4x1xf32> to vector<4x32xf32>
      %82 = vector.broadcast %80 : vector<1x32xf32> to vector<4x32xf32>
      %83 = arith.mulf %81, %82 : vector<4x32xf32>
      %84 = arith.addf %78, %83 : vector<4x32xf32>
      %85 = vector.broadcast %57 : vector<4x1xf32> to vector<4x32xf32>
      %86 = arith.mulf %84, %85 : vector<4x32xf32>
      %87 = vector.broadcast %60 : vector<4x1xf32> to vector<4x32xf32>
      %88 = arith.addf %86, %87 : vector<4x32xf32>
      %cst_22 = arith.constant 0.000000e+00 : f32
      %89 = vector.broadcast %cst_22 : f32 to vector<4x32xf32>
      %90 = arith.maximumf %88, %89 : vector<4x32xf32>
      %c0_23 = arith.constant 0 : index
      %c0_24 = arith.constant 0 : index
      %c0_25 = arith.constant 0 : index
      %91 = vector.load %arg4[%c0_23, %c0_24, %c0_25] : memref<3x4x4xf32, #tpu.memory_space<vmem>>, vector<3x4x4xf32>
      %c1_i32_26 = arith.constant 1 : i32
      %92 = tpu.dynamic_rotate %90 by %c1_i32_26 dim 1 : vector<4x32xf32>, i32 -> vector<4x32xf32>
      %93 = vector.broadcast %27 : vector<1x32xf32> to vector<4x32xf32>
      %94 = arith.mulf %92, %93 : vector<4x32xf32>
      %c31_i32 = arith.constant 31 : i32
      %95 = tpu.dynamic_rotate %90 by %c31_i32 dim 1 : vector<4x32xf32>, i32 -> vector<4x32xf32>
      %96 = vector.broadcast %31 : vector<1x32xf32> to vector<4x32xf32>
      %97 = arith.mulf %95, %96 : vector<4x32xf32>
      %98 = vector.extract_strided_slice %91 {offsets = [0, 0, 0], sizes = [1, 4, 4], strides = [1, 1, 1]} : vector<3x4x4xf32> to vector<1x4x4xf32>
      %99 = vector.shape_cast %98 : vector<1x4x4xf32> to vector<4x4xf32>
      %100 = vector.extract_strided_slice %99 {offsets = [0, 0], sizes = [4, 1], strides = [1, 1]} : vector<4x4xf32> to vector<4x1xf32>
      %101 = vector.extract_strided_slice %94 {offsets = [0, 0], sizes = [1, 32], strides = [1, 1]} : vector<4x32xf32> to vector<1x32xf32>
      %102 = vector.broadcast %100 : vector<4x1xf32> to vector<4x32xf32>
      %103 = vector.broadcast %101 : vector<1x32xf32> to vector<4x32xf32>
      %104 = arith.mulf %102, %103 : vector<4x32xf32>
      %105 = vector.extract_strided_slice %99 {offsets = [0, 1], sizes = [4, 1], strides = [1, 1]} : vector<4x4xf32> to vector<4x1xf32>
      %106 = vector.extract_strided_slice %94 {offsets = [1, 0], sizes = [1, 32], strides = [1, 1]} : vector<4x32xf32> to vector<1x32xf32>
      %107 = vector.broadcast %105 : vector<4x1xf32> to vector<4x32xf32>
      %108 = vector.broadcast %106 : vector<1x32xf32> to vector<4x32xf32>
      %109 = arith.mulf %107, %108 : vector<4x32xf32>
      %110 = arith.addf %104, %109 : vector<4x32xf32>
      %111 = vector.extract_strided_slice %99 {offsets = [0, 2], sizes = [4, 1], strides = [1, 1]} : vector<4x4xf32> to vector<4x1xf32>
      %112 = vector.extract_strided_slice %94 {offsets = [2, 0], sizes = [1, 32], strides = [1, 1]} : vector<4x32xf32> to vector<1x32xf32>
      %113 = vector.broadcast %111 : vector<4x1xf32> to vector<4x32xf32>
      %114 = vector.broadcast %112 : vector<1x32xf32> to vector<4x32xf32>
      %115 = arith.mulf %113, %114 : vector<4x32xf32>
      %116 = arith.addf %110, %115 : vector<4x32xf32>
      %117 = vector.extract_strided_slice %99 {offsets = [0, 3], sizes = [4, 1], strides = [1, 1]} : vector<4x4xf32> to vector<4x1xf32>
      %118 = vector.extract_strided_slice %94 {offsets = [3, 0], sizes = [1, 32], strides = [1, 1]} : vector<4x32xf32> to vector<1x32xf32>
      %119 = vector.broadcast %117 : vector<4x1xf32> to vector<4x32xf32>
      %120 = vector.broadcast %118 : vector<1x32xf32> to vector<4x32xf32>
      %121 = arith.mulf %119, %120 : vector<4x32xf32>
      %122 = arith.addf %116, %121 : vector<4x32xf32>
      %123 = vector.extract_strided_slice %91 {offsets = [1, 0, 0], sizes = [1, 4, 4], strides = [1, 1, 1]} : vector<3x4x4xf32> to vector<1x4x4xf32>
      %124 = vector.shape_cast %123 : vector<1x4x4xf32> to vector<4x4xf32>
      %125 = vector.extract_strided_slice %124 {offsets = [0, 0], sizes = [4, 1], strides = [1, 1]} : vector<4x4xf32> to vector<4x1xf32>
      %126 = vector.extract_strided_slice %90 {offsets = [0, 0], sizes = [1, 32], strides = [1, 1]} : vector<4x32xf32> to vector<1x32xf32>
      %127 = vector.broadcast %125 : vector<4x1xf32> to vector<4x32xf32>
      %128 = vector.broadcast %126 : vector<1x32xf32> to vector<4x32xf32>
      %129 = arith.mulf %127, %128 : vector<4x32xf32>
      %130 = vector.extract_strided_slice %124 {offsets = [0, 1], sizes = [4, 1], strides = [1, 1]} : vector<4x4xf32> to vector<4x1xf32>
      %131 = vector.extract_strided_slice %90 {offsets = [1, 0], sizes = [1, 32], strides = [1, 1]} : vector<4x32xf32> to vector<1x32xf32>
      %132 = vector.broadcast %130 : vector<4x1xf32> to vector<4x32xf32>
      %133 = vector.broadcast %131 : vector<1x32xf32> to vector<4x32xf32>
      %134 = arith.mulf %132, %133 : vector<4x32xf32>
      %135 = arith.addf %129, %134 : vector<4x32xf32>
      %136 = vector.extract_strided_slice %124 {offsets = [0, 2], sizes = [4, 1], strides = [1, 1]} : vector<4x4xf32> to vector<4x1xf32>
      %137 = vector.extract_strided_slice %90 {offsets = [2, 0], sizes = [1, 32], strides = [1, 1]} : vector<4x32xf32> to vector<1x32xf32>
      %138 = vector.broadcast %136 : vector<4x1xf32> to vector<4x32xf32>
      %139 = vector.broadcast %137 : vector<1x32xf32> to vector<4x32xf32>
      %140 = arith.mulf %138, %139 : vector<4x32xf32>
      %141 = arith.addf %135, %140 : vector<4x32xf32>
      %142 = vector.extract_strided_slice %124 {offsets = [0, 3], sizes = [4, 1], strides = [1, 1]} : vector<4x4xf32> to vector<4x1xf32>
      %143 = vector.extract_strided_slice %90 {offsets = [3, 0], sizes = [1, 32], strides = [1, 1]} : vector<4x32xf32> to vector<1x32xf32>
      %144 = vector.broadcast %142 : vector<4x1xf32> to vector<4x32xf32>
      %145 = vector.broadcast %143 : vector<1x32xf32> to vector<4x32xf32>
      %146 = arith.mulf %144, %145 : vector<4x32xf32>
      %147 = arith.addf %141, %146 : vector<4x32xf32>
      %148 = arith.addf %122, %147 : vector<4x32xf32>
      %149 = vector.extract_strided_slice %91 {offsets = [2, 0, 0], sizes = [1, 4, 4], strides = [1, 1, 1]} : vector<3x4x4xf32> to vector<1x4x4xf32>
      %150 = vector.shape_cast %149 : vector<1x4x4xf32> to vector<4x4xf32>
      %151 = vector.extract_strided_slice %150 {offsets = [0, 0], sizes = [4, 1], strides = [1, 1]} : vector<4x4xf32> to vector<4x1xf32>
      %152 = vector.extract_strided_slice %97 {offsets = [0, 0], sizes = [1, 32], strides = [1, 1]} : vector<4x32xf32> to vector<1x32xf32>
      %153 = vector.broadcast %151 : vector<4x1xf32> to vector<4x32xf32>
      %154 = vector.broadcast %152 : vector<1x32xf32> to vector<4x32xf32>
      %155 = arith.mulf %153, %154 : vector<4x32xf32>
      %156 = vector.extract_strided_slice %150 {offsets = [0, 1], sizes = [4, 1], strides = [1, 1]} : vector<4x4xf32> to vector<4x1xf32>
      %157 = vector.extract_strided_slice %97 {offsets = [1, 0], sizes = [1, 32], strides = [1, 1]} : vector<4x32xf32> to vector<1x32xf32>
      %158 = vector.broadcast %156 : vector<4x1xf32> to vector<4x32xf32>
      %159 = vector.broadcast %157 : vector<1x32xf32> to vector<4x32xf32>
      %160 = arith.mulf %158, %159 : vector<4x32xf32>
      %161 = arith.addf %155, %160 : vector<4x32xf32>
      %162 = vector.extract_strided_slice %150 {offsets = [0, 2], sizes = [4, 1], strides = [1, 1]} : vector<4x4xf32> to vector<4x1xf32>
      %163 = vector.extract_strided_slice %97 {offsets = [2, 0], sizes = [1, 32], strides = [1, 1]} : vector<4x32xf32> to vector<1x32xf32>
      %164 = vector.broadcast %162 : vector<4x1xf32> to vector<4x32xf32>
      %165 = vector.broadcast %163 : vector<1x32xf32> to vector<4x32xf32>
      %166 = arith.mulf %164, %165 : vector<4x32xf32>
      %167 = arith.addf %161, %166 : vector<4x32xf32>
      %168 = vector.extract_strided_slice %150 {offsets = [0, 3], sizes = [4, 1], strides = [1, 1]} : vector<4x4xf32> to vector<4x1xf32>
      %169 = vector.extract_strided_slice %97 {offsets = [3, 0], sizes = [1, 32], strides = [1, 1]} : vector<4x32xf32> to vector<1x32xf32>
      %170 = vector.broadcast %168 : vector<4x1xf32> to vector<4x32xf32>
      %171 = vector.broadcast %169 : vector<1x32xf32> to vector<4x32xf32>
      %172 = arith.mulf %170, %171 : vector<4x32xf32>
      %173 = arith.addf %167, %172 : vector<4x32xf32>
      %174 = arith.addf %148, %173 : vector<4x32xf32>
      %cst_27 = arith.constant dense<0.000000e+00> : vector<4xf32>
      %175 = vector.multi_reduction <add>, %174, %cst_27 [1] : vector<4x32xf32> to vector<4xf32>
      %176 = vector.shape_cast %175 : vector<4xf32> to vector<4x1xf32>
      %177 = arith.mulf %174, %174 : vector<4x32xf32>
      %cst_28 = arith.constant dense<0.000000e+00> : vector<4xf32>
      %178 = vector.multi_reduction <add>, %177, %cst_28 [1] : vector<4x32xf32> to vector<4xf32>
      %179 = vector.shape_cast %178 : vector<4xf32> to vector<4x1xf32>
      %c0_29 = arith.constant 0 : index
      %c0_30 = arith.constant 0 : index
      %180 = vector.load %arg10[%c0_29, %c0_30] : memref<4x2xf32, #tpu.memory_space<vmem>>, vector<4x2xf32>
      %181 = tpu.concatenate %176, %179 in 1 : vector<4x1xf32>, vector<4x1xf32> -> vector<4x2xf32>
      %182 = arith.addf %180, %181 : vector<4x2xf32>
      %c0_31 = arith.constant 0 : index
      %c0_32 = arith.constant 0 : index
      %183 = vector.load %arg10[%c0_31, %c0_32] : memref<4x2xf32, #tpu.memory_space<vmem>>, vector<4x2xf32>
      tpu.vector_store %arg10[%c0_31, %c0_32], %182 {strides = array<i32>} : memref<4x2xf32, #tpu.memory_space<vmem>>, vector<4x2xf32>,
    } else {
    }
    %c2_i32 = arith.constant 2 : i32
    %38 = arith.cmpi eq, %arg0, %c2_i32 : i32
    %39 = arith.extui %38 : i1 to i32
    %c0_i32_14 = arith.constant 0 : i32
    %40 = arith.cmpi ne, %39, %c0_i32_14 : i32
    scf.if %40 {
      %c0_16 = arith.constant 0 : index
      %c0_17 = arith.constant 0 : index
      %44 = vector.load %arg10[%c0_16, %c0_17] : memref<4x2xf32, #tpu.memory_space<vmem>>, vector<4x2xf32>
      %45 = vector.extract_strided_slice %44 {offsets = [0, 0], sizes = [4, 1], strides = [1, 1]} : vector<4x2xf32> to vector<4x1xf32>
      %cst = arith.constant 3.125000e-02 : f32
      %46 = vector.broadcast %cst : f32 to vector<4x1xf32>
      %47 = arith.mulf %45, %46 : vector<4x1xf32>
      %48 = vector.extract_strided_slice %44 {offsets = [0, 1], sizes = [4, 1], strides = [1, 1]} : vector<4x2xf32> to vector<4x1xf32>
      %cst_18 = arith.constant 3.125000e-02 : f32
      %49 = vector.broadcast %cst_18 : f32 to vector<4x1xf32>
      %50 = arith.mulf %48, %49 : vector<4x1xf32>
      %51 = arith.mulf %47, %47 : vector<4x1xf32>
      %52 = arith.subf %50, %51 : vector<4x1xf32>
      %53 = vector.extract_strided_slice %6 {offsets = [0, 2], sizes = [4, 1], strides = [1, 1]} : vector<8x8xf32> to vector<4x1xf32>
      %cst_19 = arith.constant 9.99999974E-6 : f32
      %54 = vector.broadcast %cst_19 : f32 to vector<4x1xf32>
      %55 = arith.addf %52, %54 : vector<4x1xf32>
      %56 = math.rsqrt %55 : vector<4x1xf32>
      %57 = arith.mulf %53, %56 : vector<4x1xf32>
      %58 = vector.extract_strided_slice %6 {offsets = [0, 3], sizes = [4, 1], strides = [1, 1]} : vector<8x8xf32> to vector<4x1xf32>
      %59 = arith.mulf %47, %57 : vector<4x1xf32>
      %60 = arith.subf %58, %59 : vector<4x1xf32>
      %c0_20 = arith.constant 0 : index
      %c0_21 = arith.constant 0 : index
      %61 = vector.load %arg9[%c0_20, %c0_21] : memref<4x2xf32, #tpu.memory_space<vmem>>, vector<4x2xf32>
      %62 = vector.extract_strided_slice %61 {offsets = [0, 0], sizes = [4, 1], strides = [1, 1]} : vector<4x2xf32> to vector<4x1xf32>
      %cst_22 = arith.constant 3.125000e-02 : f32
      %63 = vector.broadcast %cst_22 : f32 to vector<4x1xf32>
      %64 = arith.mulf %62, %63 : vector<4x1xf32>
      %65 = vector.extract_strided_slice %61 {offsets = [0, 1], sizes = [4, 1], strides = [1, 1]} : vector<4x2xf32> to vector<4x1xf32>
      %cst_23 = arith.constant 3.125000e-02 : f32
      %66 = vector.broadcast %cst_23 : f32 to vector<4x1xf32>
      %67 = arith.mulf %65, %66 : vector<4x1xf32>
      %68 = arith.mulf %64, %64 : vector<4x1xf32>
      %69 = arith.subf %67, %68 : vector<4x1xf32>
      %70 = vector.extract_strided_slice %6 {offsets = [0, 0], sizes = [4, 1], strides = [1, 1]} : vector<8x8xf32> to vector<4x1xf32>
      %cst_24 = arith.constant 9.99999974E-6 : f32
      %71 = vector.broadcast %cst_24 : f32 to vector<4x1xf32>
      %72 = arith.addf %69, %71 : vector<4x1xf32>
      %73 = math.rsqrt %72 : vector<4x1xf32>
      %74 = arith.mulf %70, %73 : vector<4x1xf32>
      %75 = vector.extract_strided_slice %6 {offsets = [0, 1], sizes = [4, 1], strides = [1, 1]} : vector<8x8xf32> to vector<4x1xf32>
      %76 = arith.mulf %64, %74 : vector<4x1xf32>
      %77 = arith.subf %75, %76 : vector<4x1xf32>
      %c0_25 = arith.constant 0 : index
      %c0_26 = arith.constant 0 : index
      %78 = vector.load %arg3[%c0_25, %c0_26] : memref<4x4xf32, #tpu.memory_space<vmem>>, vector<4x4xf32>
      %79 = vector.extract_strided_slice %78 {offsets = [0, 0], sizes = [4, 1], strides = [1, 1]} : vector<4x4xf32> to vector<4x1xf32>
      %80 = vector.extract_strided_slice %5 {offsets = [0, 0], sizes = [1, 32], strides = [1, 1]} : vector<4x32xf32> to vector<1x32xf32>
      %81 = vector.broadcast %79 : vector<4x1xf32> to vector<4x32xf32>
      %82 = vector.broadcast %80 : vector<1x32xf32> to vector<4x32xf32>
      %83 = arith.mulf %81, %82 : vector<4x32xf32>
      %84 = vector.extract_strided_slice %78 {offsets = [0, 1], sizes = [4, 1], strides = [1, 1]} : vector<4x4xf32> to vector<4x1xf32>
      %85 = vector.extract_strided_slice %5 {offsets = [1, 0], sizes = [1, 32], strides = [1, 1]} : vector<4x32xf32> to vector<1x32xf32>
      %86 = vector.broadcast %84 : vector<4x1xf32> to vector<4x32xf32>
      %87 = vector.broadcast %85 : vector<1x32xf32> to vector<4x32xf32>
      %88 = arith.mulf %86, %87 : vector<4x32xf32>
      %89 = arith.addf %83, %88 : vector<4x32xf32>
      %90 = vector.extract_strided_slice %78 {offsets = [0, 2], sizes = [4, 1], strides = [1, 1]} : vector<4x4xf32> to vector<4x1xf32>
      %91 = vector.extract_strided_slice %5 {offsets = [2, 0], sizes = [1, 32], strides = [1, 1]} : vector<4x32xf32> to vector<1x32xf32>
      %92 = vector.broadcast %90 : vector<4x1xf32> to vector<4x32xf32>
      %93 = vector.broadcast %91 : vector<1x32xf32> to vector<4x32xf32>
      %94 = arith.mulf %92, %93 : vector<4x32xf32>
      %95 = arith.addf %89, %94 : vector<4x32xf32>
      %96 = vector.extract_strided_slice %78 {offsets = [0, 3], sizes = [4, 1], strides = [1, 1]} : vector<4x4xf32> to vector<4x1xf32>
      %97 = vector.extract_strided_slice %5 {offsets = [3, 0], sizes = [1, 32], strides = [1, 1]} : vector<4x32xf32> to vector<1x32xf32>
      %98 = vector.broadcast %96 : vector<4x1xf32> to vector<4x32xf32>
      %99 = vector.broadcast %97 : vector<1x32xf32> to vector<4x32xf32>
      %100 = arith.mulf %98, %99 : vector<4x32xf32>
      %101 = arith.addf %95, %100 : vector<4x32xf32>
      %102 = vector.broadcast %74 : vector<4x1xf32> to vector<4x32xf32>
      %103 = arith.mulf %101, %102 : vector<4x32xf32>
      %104 = vector.broadcast %77 : vector<4x1xf32> to vector<4x32xf32>
      %105 = arith.addf %103, %104 : vector<4x32xf32>
      %cst_27 = arith.constant 0.000000e+00 : f32
      %106 = vector.broadcast %cst_27 : f32 to vector<4x32xf32>
      %107 = arith.maximumf %105, %106 : vector<4x32xf32>
      %c0_28 = arith.constant 0 : index
      %c0_29 = arith.constant 0 : index
      %c0_30 = arith.constant 0 : index
      %108 = vector.load %arg4[%c0_28, %c0_29, %c0_30] : memref<3x4x4xf32, #tpu.memory_space<vmem>>, vector<3x4x4xf32>
      %c1_i32_31 = arith.constant 1 : i32
      %109 = tpu.dynamic_rotate %107 by %c1_i32_31 dim 1 : vector<4x32xf32>, i32 -> vector<4x32xf32>
      %110 = vector.broadcast %27 : vector<1x32xf32> to vector<4x32xf32>
      %111 = arith.mulf %109, %110 : vector<4x32xf32>
      %c31_i32 = arith.constant 31 : i32
      %112 = tpu.dynamic_rotate %107 by %c31_i32 dim 1 : vector<4x32xf32>, i32 -> vector<4x32xf32>
      %113 = vector.broadcast %31 : vector<1x32xf32> to vector<4x32xf32>
      %114 = arith.mulf %112, %113 : vector<4x32xf32>
      %115 = vector.extract_strided_slice %108 {offsets = [0, 0, 0], sizes = [1, 4, 4], strides = [1, 1, 1]} : vector<3x4x4xf32> to vector<1x4x4xf32>
      %116 = vector.shape_cast %115 : vector<1x4x4xf32> to vector<4x4xf32>
      %117 = vector.extract_strided_slice %116 {offsets = [0, 0], sizes = [4, 1], strides = [1, 1]} : vector<4x4xf32> to vector<4x1xf32>
      %118 = vector.extract_strided_slice %111 {offsets = [0, 0], sizes = [1, 32], strides = [1, 1]} : vector<4x32xf32> to vector<1x32xf32>
      %119 = vector.broadcast %117 : vector<4x1xf32> to vector<4x32xf32>
      %120 = vector.broadcast %118 : vector<1x32xf32> to vector<4x32xf32>
      %121 = arith.mulf %119, %120 : vector<4x32xf32>
      %122 = vector.extract_strided_slice %116 {offsets = [0, 1], sizes = [4, 1], strides = [1, 1]} : vector<4x4xf32> to vector<4x1xf32>
      %123 = vector.extract_strided_slice %111 {offsets = [1, 0], sizes = [1, 32], strides = [1, 1]} : vector<4x32xf32> to vector<1x32xf32>
      %124 = vector.broadcast %122 : vector<4x1xf32> to vector<4x32xf32>
      %125 = vector.broadcast %123 : vector<1x32xf32> to vector<4x32xf32>
      %126 = arith.mulf %124, %125 : vector<4x32xf32>
      %127 = arith.addf %121, %126 : vector<4x32xf32>
      %128 = vector.extract_strided_slice %116 {offsets = [0, 2], sizes = [4, 1], strides = [1, 1]} : vector<4x4xf32> to vector<4x1xf32>
      %129 = vector.extract_strided_slice %111 {offsets = [2, 0], sizes = [1, 32], strides = [1, 1]} : vector<4x32xf32> to vector<1x32xf32>
      %130 = vector.broadcast %128 : vector<4x1xf32> to vector<4x32xf32>
      %131 = vector.broadcast %129 : vector<1x32xf32> to vector<4x32xf32>
      %132 = arith.mulf %130, %131 : vector<4x32xf32>
      %133 = arith.addf %127, %132 : vector<4x32xf32>
      %134 = vector.extract_strided_slice %116 {offsets = [0, 3], sizes = [4, 1], strides = [1, 1]} : vector<4x4xf32> to vector<4x1xf32>
      %135 = vector.extract_strided_slice %111 {offsets = [3, 0], sizes = [1, 32], strides = [1, 1]} : vector<4x32xf32> to vector<1x32xf32>
      %136 = vector.broadcast %134 : vector<4x1xf32> to vector<4x32xf32>
      %137 = vector.broadcast %135 : vector<1x32xf32> to vector<4x32xf32>
      %138 = arith.mulf %136, %137 : vector<4x32xf32>
      %139 = arith.addf %133, %138 : vector<4x32xf32>
      %140 = vector.extract_strided_slice %108 {offsets = [1, 0, 0], sizes = [1, 4, 4], strides = [1, 1, 1]} : vector<3x4x4xf32> to vector<1x4x4xf32>
      %141 = vector.shape_cast %140 : vector<1x4x4xf32> to vector<4x4xf32>
      %142 = vector.extract_strided_slice %141 {offsets = [0, 0], sizes = [4, 1], strides = [1, 1]} : vector<4x4xf32> to vector<4x1xf32>
      %143 = vector.extract_strided_slice %107 {offsets = [0, 0], sizes = [1, 32], strides = [1, 1]} : vector<4x32xf32> to vector<1x32xf32>
      %144 = vector.broadcast %142 : vector<4x1xf32> to vector<4x32xf32>
      %145 = vector.broadcast %143 : vector<1x32xf32> to vector<4x32xf32>
      %146 = arith.mulf %144, %145 : vector<4x32xf32>
      %147 = vector.extract_strided_slice %141 {offsets = [0, 1], sizes = [4, 1], strides = [1, 1]} : vector<4x4xf32> to vector<4x1xf32>
      %148 = vector.extract_strided_slice %107 {offsets = [1, 0], sizes = [1, 32], strides = [1, 1]} : vector<4x32xf32> to vector<1x32xf32>
      %149 = vector.broadcast %147 : vector<4x1xf32> to vector<4x32xf32>
      %150 = vector.broadcast %148 : vector<1x32xf32> to vector<4x32xf32>
      %151 = arith.mulf %149, %150 : vector<4x32xf32>
      %152 = arith.addf %146, %151 : vector<4x32xf32>
      %153 = vector.extract_strided_slice %141 {offsets = [0, 2], sizes = [4, 1], strides = [1, 1]} : vector<4x4xf32> to vector<4x1xf32>
      %154 = vector.extract_strided_slice %107 {offsets = [2, 0], sizes = [1, 32], strides = [1, 1]} : vector<4x32xf32> to vector<1x32xf32>
      %155 = vector.broadcast %153 : vector<4x1xf32> to vector<4x32xf32>
      %156 = vector.broadcast %154 : vector<1x32xf32> to vector<4x32xf32>
      %157 = arith.mulf %155, %156 : vector<4x32xf32>
      %158 = arith.addf %152, %157 : vector<4x32xf32>
      %159 = vector.extract_strided_slice %141 {offsets = [0, 3], sizes = [4, 1], strides = [1, 1]} : vector<4x4xf32> to vector<4x1xf32>
      %160 = vector.extract_strided_slice %107 {offsets = [3, 0], sizes = [1, 32], strides = [1, 1]} : vector<4x32xf32> to vector<1x32xf32>
      %161 = vector.broadcast %159 : vector<4x1xf32> to vector<4x32xf32>
      %162 = vector.broadcast %160 : vector<1x32xf32> to vector<4x32xf32>
      %163 = arith.mulf %161, %162 : vector<4x32xf32>
      %164 = arith.addf %158, %163 : vector<4x32xf32>
      %165 = arith.addf %139, %164 : vector<4x32xf32>
      %166 = vector.extract_strided_slice %108 {offsets = [2, 0, 0], sizes = [1, 4, 4], strides = [1, 1, 1]} : vector<3x4x4xf32> to vector<1x4x4xf32>
      %167 = vector.shape_cast %166 : vector<1x4x4xf32> to vector<4x4xf32>
      %168 = vector.extract_strided_slice %167 {offsets = [0, 0], sizes = [4, 1], strides = [1, 1]} : vector<4x4xf32> to vector<4x1xf32>
      %169 = vector.extract_strided_slice %114 {offsets = [0, 0], sizes = [1, 32], strides = [1, 1]} : vector<4x32xf32> to vector<1x32xf32>
      %170 = vector.broadcast %168 : vector<4x1xf32> to vector<4x32xf32>
      %171 = vector.broadcast %169 : vector<1x32xf32> to vector<4x32xf32>
      %172 = arith.mulf %170, %171 : vector<4x32xf32>
      %173 = vector.extract_strided_slice %167 {offsets = [0, 1], sizes = [4, 1], strides = [1, 1]} : vector<4x4xf32> to vector<4x1xf32>
      %174 = vector.extract_strided_slice %114 {offsets = [1, 0], sizes = [1, 32], strides = [1, 1]} : vector<4x32xf32> to vector<1x32xf32>
      %175 = vector.broadcast %173 : vector<4x1xf32> to vector<4x32xf32>
      %176 = vector.broadcast %174 : vector<1x32xf32> to vector<4x32xf32>
      %177 = arith.mulf %175, %176 : vector<4x32xf32>
      %178 = arith.addf %172, %177 : vector<4x32xf32>
      %179 = vector.extract_strided_slice %167 {offsets = [0, 2], sizes = [4, 1], strides = [1, 1]} : vector<4x4xf32> to vector<4x1xf32>
      %180 = vector.extract_strided_slice %114 {offsets = [2, 0], sizes = [1, 32], strides = [1, 1]} : vector<4x32xf32> to vector<1x32xf32>
      %181 = vector.broadcast %179 : vector<4x1xf32> to vector<4x32xf32>
      %182 = vector.broadcast %180 : vector<1x32xf32> to vector<4x32xf32>
      %183 = arith.mulf %181, %182 : vector<4x32xf32>
      %184 = arith.addf %178, %183 : vector<4x32xf32>
      %185 = vector.extract_strided_slice %167 {offsets = [0, 3], sizes = [4, 1], strides = [1, 1]} : vector<4x4xf32> to vector<4x1xf32>
      %186 = vector.extract_strided_slice %114 {offsets = [3, 0], sizes = [1, 32], strides = [1, 1]} : vector<4x32xf32> to vector<1x32xf32>
      %187 = vector.broadcast %185 : vector<4x1xf32> to vector<4x32xf32>
      %188 = vector.broadcast %186 : vector<1x32xf32> to vector<4x32xf32>
      %189 = arith.mulf %187, %188 : vector<4x32xf32>
      %190 = arith.addf %184, %189 : vector<4x32xf32>
      %191 = arith.addf %165, %190 : vector<4x32xf32>
      %192 = vector.broadcast %57 : vector<4x1xf32> to vector<4x32xf32>
      %193 = arith.mulf %191, %192 : vector<4x32xf32>
      %194 = vector.broadcast %60 : vector<4x1xf32> to vector<4x32xf32>
      %195 = arith.addf %193, %194 : vector<4x32xf32>
      %cst_32 = arith.constant 0.000000e+00 : f32
      %196 = vector.broadcast %cst_32 : f32 to vector<4x32xf32>
      %197 = arith.maximumf %195, %196 : vector<4x32xf32>
      %c0_33 = arith.constant 0 : index
      %c0_34 = arith.constant 0 : index
      %198 = vector.load %arg5[%c0_33, %c0_34] : memref<8x4xf32, #tpu.memory_space<vmem>>, vector<8x4xf32>
      %199 = vector.extract_strided_slice %198 {offsets = [0, 0], sizes = [8, 1], strides = [1, 1]} : vector<8x4xf32> to vector<8x1xf32>
      %200 = vector.extract_strided_slice %197 {offsets = [0, 0], sizes = [1, 32], strides = [1, 1]} : vector<4x32xf32> to vector<1x32xf32>
      %201 = vector.broadcast %199 : vector<8x1xf32> to vector<8x32xf32>
      %202 = vector.broadcast %200 : vector<1x32xf32> to vector<8x32xf32>
      %203 = arith.mulf %201, %202 : vector<8x32xf32>
      %204 = vector.extract_strided_slice %198 {offsets = [0, 1], sizes = [8, 1], strides = [1, 1]} : vector<8x4xf32> to vector<8x1xf32>
      %205 = vector.extract_strided_slice %197 {offsets = [1, 0], sizes = [1, 32], strides = [1, 1]} : vector<4x32xf32> to vector<1x32xf32>
      %206 = vector.broadcast %204 : vector<8x1xf32> to vector<8x32xf32>
      %207 = vector.broadcast %205 : vector<1x32xf32> to vector<8x32xf32>
      %208 = arith.mulf %206, %207 : vector<8x32xf32>
      %209 = arith.addf %203, %208 : vector<8x32xf32>
      %210 = vector.extract_strided_slice %198 {offsets = [0, 2], sizes = [8, 1], strides = [1, 1]} : vector<8x4xf32> to vector<8x1xf32>
      %211 = vector.extract_strided_slice %197 {offsets = [2, 0], sizes = [1, 32], strides = [1, 1]} : vector<4x32xf32> to vector<1x32xf32>
      %212 = vector.broadcast %210 : vector<8x1xf32> to vector<8x32xf32>
      %213 = vector.broadcast %211 : vector<1x32xf32> to vector<8x32xf32>
      %214 = arith.mulf %212, %213 : vector<8x32xf32>
      %215 = arith.addf %209, %214 : vector<8x32xf32>
      %216 = vector.extract_strided_slice %198 {offsets = [0, 3], sizes = [8, 1], strides = [1, 1]} : vector<8x4xf32> to vector<8x1xf32>
      %217 = vector.extract_strided_slice %197 {offsets = [3, 0], sizes = [1, 32], strides = [1, 1]} : vector<4x32xf32> to vector<1x32xf32>
      %218 = vector.broadcast %216 : vector<8x1xf32> to vector<8x32xf32>
      %219 = vector.broadcast %217 : vector<1x32xf32> to vector<8x32xf32>
      %220 = arith.mulf %218, %219 : vector<8x32xf32>
      %221 = arith.addf %215, %220 : vector<8x32xf32>
      %cst_35 = arith.constant dense<0.000000e+00> : vector<8xf32>
      %222 = vector.multi_reduction <add>, %221, %cst_35 [1] : vector<8x32xf32> to vector<8xf32>
      %223 = vector.shape_cast %222 : vector<8xf32> to vector<8x1xf32>
      %224 = arith.mulf %221, %221 : vector<8x32xf32>
      %cst_36 = arith.constant dense<0.000000e+00> : vector<8xf32>
      %225 = vector.multi_reduction <add>, %224, %cst_36 [1] : vector<8x32xf32> to vector<8xf32>
      %226 = vector.shape_cast %225 : vector<8xf32> to vector<8x1xf32>
      %c0_37 = arith.constant 0 : index
      %c0_38 = arith.constant 0 : index
      %227 = vector.load %arg11[%c0_37, %c0_38] : memref<8x2xf32, #tpu.memory_space<vmem>>, vector<8x2xf32>
      %228 = tpu.concatenate %223, %226 in 1 : vector<8x1xf32>, vector<8x1xf32> -> vector<8x2xf32>
      %229 = arith.addf %227, %228 : vector<8x2xf32>
      %c0_39 = arith.constant 0 : index
      %c0_40 = arith.constant 0 : index
      %230 = vector.load %arg11[%c0_39, %c0_40] : memref<8x2xf32, #tpu.memory_space<vmem>>, vector<8x2xf32>
      tpu.vector_store %arg11[%c0_39, %c0_40], %229 {strides = array<i32>} : memref<8x2xf32, #tpu.memory_space<vmem>>, vector<8x2xf32>,
    } else {
    }
    %c3_i32 = arith.constant 3 : i32
    %41 = arith.cmpi eq, %arg0, %c3_i32 : i32
    %42 = arith.extui %41 : i1 to i32
    %c0_i32_15 = arith.constant 0 : i32
    %43 = arith.cmpi ne, %42, %c0_i32_15 : i32
    scf.if %43 {
      %c0_16 = arith.constant 0 : index
      %c0_17 = arith.constant 0 : index
      %44 = vector.load %arg11[%c0_16, %c0_17] : memref<8x2xf32, #tpu.memory_space<vmem>>, vector<8x2xf32>
      %45 = vector.extract_strided_slice %44 {offsets = [0, 0], sizes = [8, 1], strides = [1, 1]} : vector<8x2xf32> to vector<8x1xf32>
      %cst = arith.constant 3.125000e-02 : f32
      %46 = vector.broadcast %cst : f32 to vector<8x1xf32>
      %47 = arith.mulf %45, %46 : vector<8x1xf32>
      %48 = vector.extract_strided_slice %44 {offsets = [0, 1], sizes = [8, 1], strides = [1, 1]} : vector<8x2xf32> to vector<8x1xf32>
      %cst_18 = arith.constant 3.125000e-02 : f32
      %49 = vector.broadcast %cst_18 : f32 to vector<8x1xf32>
      %50 = arith.mulf %48, %49 : vector<8x1xf32>
      %51 = arith.mulf %47, %47 : vector<8x1xf32>
      %52 = arith.subf %50, %51 : vector<8x1xf32>
      %53 = vector.extract_strided_slice %6 {offsets = [0, 4], sizes = [8, 1], strides = [1, 1]} : vector<8x8xf32> to vector<8x1xf32>
      %cst_19 = arith.constant 9.99999974E-6 : f32
      %54 = vector.broadcast %cst_19 : f32 to vector<8x1xf32>
      %55 = arith.addf %52, %54 : vector<8x1xf32>
      %56 = math.rsqrt %55 : vector<8x1xf32>
      %57 = arith.mulf %53, %56 : vector<8x1xf32>
      %58 = vector.extract_strided_slice %6 {offsets = [0, 5], sizes = [8, 1], strides = [1, 1]} : vector<8x8xf32> to vector<8x1xf32>
      %59 = arith.mulf %47, %57 : vector<8x1xf32>
      %60 = arith.subf %58, %59 : vector<8x1xf32>
      %c0_20 = arith.constant 0 : index
      %c0_21 = arith.constant 0 : index
      %61 = vector.load %arg12[%c0_20, %c0_21] : memref<8x2xf32, #tpu.memory_space<vmem>>, vector<8x2xf32>
      %62 = vector.extract_strided_slice %61 {offsets = [0, 0], sizes = [8, 1], strides = [1, 1]} : vector<8x2xf32> to vector<8x1xf32>
      %cst_22 = arith.constant 3.125000e-02 : f32
      %63 = vector.broadcast %cst_22 : f32 to vector<8x1xf32>
      %64 = arith.mulf %62, %63 : vector<8x1xf32>
      %65 = vector.extract_strided_slice %61 {offsets = [0, 1], sizes = [8, 1], strides = [1, 1]} : vector<8x2xf32> to vector<8x1xf32>
      %cst_23 = arith.constant 3.125000e-02 : f32
      %66 = vector.broadcast %cst_23 : f32 to vector<8x1xf32>
      %67 = arith.mulf %65, %66 : vector<8x1xf32>
      %68 = arith.mulf %64, %64 : vector<8x1xf32>
      %69 = arith.subf %67, %68 : vector<8x1xf32>
      %70 = vector.extract_strided_slice %6 {offsets = [0, 6], sizes = [8, 1], strides = [1, 1]} : vector<8x8xf32> to vector<8x1xf32>
      %cst_24 = arith.constant 9.99999974E-6 : f32
      %71 = vector.broadcast %cst_24 : f32 to vector<8x1xf32>
      %72 = arith.addf %69, %71 : vector<8x1xf32>
      %73 = math.rsqrt %72 : vector<8x1xf32>
      %74 = arith.mulf %70, %73 : vector<8x1xf32>
      %75 = vector.extract_strided_slice %6 {offsets = [0, 7], sizes = [8, 1], strides = [1, 1]} : vector<8x8xf32> to vector<8x1xf32>
      %76 = arith.mulf %64, %74 : vector<8x1xf32>
      %77 = arith.subf %75, %76 : vector<8x1xf32>
      %c0_25 = arith.constant 0 : index
      %c0_26 = arith.constant 0 : index
      %78 = vector.load %arg10[%c0_25, %c0_26] : memref<4x2xf32, #tpu.memory_space<vmem>>, vector<4x2xf32>
      %79 = vector.extract_strided_slice %78 {offsets = [0, 0], sizes = [4, 1], strides = [1, 1]} : vector<4x2xf32> to vector<4x1xf32>
      %cst_27 = arith.constant 3.125000e-02 : f32
      %80 = vector.broadcast %cst_27 : f32 to vector<4x1xf32>
      %81 = arith.mulf %79, %80 : vector<4x1xf32>
      %82 = vector.extract_strided_slice %78 {offsets = [0, 1], sizes = [4, 1], strides = [1, 1]} : vector<4x2xf32> to vector<4x1xf32>
      %cst_28 = arith.constant 3.125000e-02 : f32
      %83 = vector.broadcast %cst_28 : f32 to vector<4x1xf32>
      %84 = arith.mulf %82, %83 : vector<4x1xf32>
      %85 = arith.mulf %81, %81 : vector<4x1xf32>
      %86 = arith.subf %84, %85 : vector<4x1xf32>
      %87 = vector.extract_strided_slice %6 {offsets = [0, 2], sizes = [4, 1], strides = [1, 1]} : vector<8x8xf32> to vector<4x1xf32>
      %cst_29 = arith.constant 9.99999974E-6 : f32
      %88 = vector.broadcast %cst_29 : f32 to vector<4x1xf32>
      %89 = arith.addf %86, %88 : vector<4x1xf32>
      %90 = math.rsqrt %89 : vector<4x1xf32>
      %91 = arith.mulf %87, %90 : vector<4x1xf32>
      %92 = vector.extract_strided_slice %6 {offsets = [0, 3], sizes = [4, 1], strides = [1, 1]} : vector<8x8xf32> to vector<4x1xf32>
      %93 = arith.mulf %81, %91 : vector<4x1xf32>
      %94 = arith.subf %92, %93 : vector<4x1xf32>
      %c0_30 = arith.constant 0 : index
      %c0_31 = arith.constant 0 : index
      %95 = vector.load %arg9[%c0_30, %c0_31] : memref<4x2xf32, #tpu.memory_space<vmem>>, vector<4x2xf32>
      %96 = vector.extract_strided_slice %95 {offsets = [0, 0], sizes = [4, 1], strides = [1, 1]} : vector<4x2xf32> to vector<4x1xf32>
      %cst_32 = arith.constant 3.125000e-02 : f32
      %97 = vector.broadcast %cst_32 : f32 to vector<4x1xf32>
      %98 = arith.mulf %96, %97 : vector<4x1xf32>
      %99 = vector.extract_strided_slice %95 {offsets = [0, 1], sizes = [4, 1], strides = [1, 1]} : vector<4x2xf32> to vector<4x1xf32>
      %cst_33 = arith.constant 3.125000e-02 : f32
      %100 = vector.broadcast %cst_33 : f32 to vector<4x1xf32>
      %101 = arith.mulf %99, %100 : vector<4x1xf32>
      %102 = arith.mulf %98, %98 : vector<4x1xf32>
      %103 = arith.subf %101, %102 : vector<4x1xf32>
      %104 = vector.extract_strided_slice %6 {offsets = [0, 0], sizes = [4, 1], strides = [1, 1]} : vector<8x8xf32> to vector<4x1xf32>
      %cst_34 = arith.constant 9.99999974E-6 : f32
      %105 = vector.broadcast %cst_34 : f32 to vector<4x1xf32>
      %106 = arith.addf %103, %105 : vector<4x1xf32>
      %107 = math.rsqrt %106 : vector<4x1xf32>
      %108 = arith.mulf %104, %107 : vector<4x1xf32>
      %109 = vector.extract_strided_slice %6 {offsets = [0, 1], sizes = [4, 1], strides = [1, 1]} : vector<8x8xf32> to vector<4x1xf32>
      %110 = arith.mulf %98, %108 : vector<4x1xf32>
      %111 = arith.subf %109, %110 : vector<4x1xf32>
      %c0_35 = arith.constant 0 : index
      %c0_36 = arith.constant 0 : index
      %112 = vector.load %arg3[%c0_35, %c0_36] : memref<4x4xf32, #tpu.memory_space<vmem>>, vector<4x4xf32>
      %113 = vector.extract_strided_slice %112 {offsets = [0, 0], sizes = [4, 1], strides = [1, 1]} : vector<4x4xf32> to vector<4x1xf32>
      %114 = vector.extract_strided_slice %5 {offsets = [0, 0], sizes = [1, 32], strides = [1, 1]} : vector<4x32xf32> to vector<1x32xf32>
      %115 = vector.broadcast %113 : vector<4x1xf32> to vector<4x32xf32>
      %116 = vector.broadcast %114 : vector<1x32xf32> to vector<4x32xf32>
      %117 = arith.mulf %115, %116 : vector<4x32xf32>
      %118 = vector.extract_strided_slice %112 {offsets = [0, 1], sizes = [4, 1], strides = [1, 1]} : vector<4x4xf32> to vector<4x1xf32>
      %119 = vector.extract_strided_slice %5 {offsets = [1, 0], sizes = [1, 32], strides = [1, 1]} : vector<4x32xf32> to vector<1x32xf32>
      %120 = vector.broadcast %118 : vector<4x1xf32> to vector<4x32xf32>
      %121 = vector.broadcast %119 : vector<1x32xf32> to vector<4x32xf32>
      %122 = arith.mulf %120, %121 : vector<4x32xf32>
      %123 = arith.addf %117, %122 : vector<4x32xf32>
      %124 = vector.extract_strided_slice %112 {offsets = [0, 2], sizes = [4, 1], strides = [1, 1]} : vector<4x4xf32> to vector<4x1xf32>
      %125 = vector.extract_strided_slice %5 {offsets = [2, 0], sizes = [1, 32], strides = [1, 1]} : vector<4x32xf32> to vector<1x32xf32>
      %126 = vector.broadcast %124 : vector<4x1xf32> to vector<4x32xf32>
      %127 = vector.broadcast %125 : vector<1x32xf32> to vector<4x32xf32>
      %128 = arith.mulf %126, %127 : vector<4x32xf32>
      %129 = arith.addf %123, %128 : vector<4x32xf32>
      %130 = vector.extract_strided_slice %112 {offsets = [0, 3], sizes = [4, 1], strides = [1, 1]} : vector<4x4xf32> to vector<4x1xf32>
      %131 = vector.extract_strided_slice %5 {offsets = [3, 0], sizes = [1, 32], strides = [1, 1]} : vector<4x32xf32> to vector<1x32xf32>
      %132 = vector.broadcast %130 : vector<4x1xf32> to vector<4x32xf32>
      %133 = vector.broadcast %131 : vector<1x32xf32> to vector<4x32xf32>
      %134 = arith.mulf %132, %133 : vector<4x32xf32>
      %135 = arith.addf %129, %134 : vector<4x32xf32>
      %136 = vector.broadcast %108 : vector<4x1xf32> to vector<4x32xf32>
      %137 = arith.mulf %135, %136 : vector<4x32xf32>
      %138 = vector.broadcast %111 : vector<4x1xf32> to vector<4x32xf32>
      %139 = arith.addf %137, %138 : vector<4x32xf32>
      %cst_37 = arith.constant 0.000000e+00 : f32
      %140 = vector.broadcast %cst_37 : f32 to vector<4x32xf32>
      %141 = arith.maximumf %139, %140 : vector<4x32xf32>
      %c0_38 = arith.constant 0 : index
      %c0_39 = arith.constant 0 : index
      %c0_40 = arith.constant 0 : index
      %142 = vector.load %arg4[%c0_38, %c0_39, %c0_40] : memref<3x4x4xf32, #tpu.memory_space<vmem>>, vector<3x4x4xf32>
      %c1_i32_41 = arith.constant 1 : i32
      %143 = tpu.dynamic_rotate %141 by %c1_i32_41 dim 1 : vector<4x32xf32>, i32 -> vector<4x32xf32>
      %144 = vector.broadcast %27 : vector<1x32xf32> to vector<4x32xf32>
      %145 = arith.mulf %143, %144 : vector<4x32xf32>
      %c31_i32 = arith.constant 31 : i32
      %146 = tpu.dynamic_rotate %141 by %c31_i32 dim 1 : vector<4x32xf32>, i32 -> vector<4x32xf32>
      %147 = vector.broadcast %31 : vector<1x32xf32> to vector<4x32xf32>
      %148 = arith.mulf %146, %147 : vector<4x32xf32>
      %149 = vector.extract_strided_slice %142 {offsets = [0, 0, 0], sizes = [1, 4, 4], strides = [1, 1, 1]} : vector<3x4x4xf32> to vector<1x4x4xf32>
      %150 = vector.shape_cast %149 : vector<1x4x4xf32> to vector<4x4xf32>
      %151 = vector.extract_strided_slice %150 {offsets = [0, 0], sizes = [4, 1], strides = [1, 1]} : vector<4x4xf32> to vector<4x1xf32>
      %152 = vector.extract_strided_slice %145 {offsets = [0, 0], sizes = [1, 32], strides = [1, 1]} : vector<4x32xf32> to vector<1x32xf32>
      %153 = vector.broadcast %151 : vector<4x1xf32> to vector<4x32xf32>
      %154 = vector.broadcast %152 : vector<1x32xf32> to vector<4x32xf32>
      %155 = arith.mulf %153, %154 : vector<4x32xf32>
      %156 = vector.extract_strided_slice %150 {offsets = [0, 1], sizes = [4, 1], strides = [1, 1]} : vector<4x4xf32> to vector<4x1xf32>
      %157 = vector.extract_strided_slice %145 {offsets = [1, 0], sizes = [1, 32], strides = [1, 1]} : vector<4x32xf32> to vector<1x32xf32>
      %158 = vector.broadcast %156 : vector<4x1xf32> to vector<4x32xf32>
      %159 = vector.broadcast %157 : vector<1x32xf32> to vector<4x32xf32>
      %160 = arith.mulf %158, %159 : vector<4x32xf32>
      %161 = arith.addf %155, %160 : vector<4x32xf32>
      %162 = vector.extract_strided_slice %150 {offsets = [0, 2], sizes = [4, 1], strides = [1, 1]} : vector<4x4xf32> to vector<4x1xf32>
      %163 = vector.extract_strided_slice %145 {offsets = [2, 0], sizes = [1, 32], strides = [1, 1]} : vector<4x32xf32> to vector<1x32xf32>
      %164 = vector.broadcast %162 : vector<4x1xf32> to vector<4x32xf32>
      %165 = vector.broadcast %163 : vector<1x32xf32> to vector<4x32xf32>
      %166 = arith.mulf %164, %165 : vector<4x32xf32>
      %167 = arith.addf %161, %166 : vector<4x32xf32>
      %168 = vector.extract_strided_slice %150 {offsets = [0, 3], sizes = [4, 1], strides = [1, 1]} : vector<4x4xf32> to vector<4x1xf32>
      %169 = vector.extract_strided_slice %145 {offsets = [3, 0], sizes = [1, 32], strides = [1, 1]} : vector<4x32xf32> to vector<1x32xf32>
      %170 = vector.broadcast %168 : vector<4x1xf32> to vector<4x32xf32>
      %171 = vector.broadcast %169 : vector<1x32xf32> to vector<4x32xf32>
      %172 = arith.mulf %170, %171 : vector<4x32xf32>
      %173 = arith.addf %167, %172 : vector<4x32xf32>
      %174 = vector.extract_strided_slice %142 {offsets = [1, 0, 0], sizes = [1, 4, 4], strides = [1, 1, 1]} : vector<3x4x4xf32> to vector<1x4x4xf32>
      %175 = vector.shape_cast %174 : vector<1x4x4xf32> to vector<4x4xf32>
      %176 = vector.extract_strided_slice %175 {offsets = [0, 0], sizes = [4, 1], strides = [1, 1]} : vector<4x4xf32> to vector<4x1xf32>
      %177 = vector.extract_strided_slice %141 {offsets = [0, 0], sizes = [1, 32], strides = [1, 1]} : vector<4x32xf32> to vector<1x32xf32>
      %178 = vector.broadcast %176 : vector<4x1xf32> to vector<4x32xf32>
      %179 = vector.broadcast %177 : vector<1x32xf32> to vector<4x32xf32>
      %180 = arith.mulf %178, %179 : vector<4x32xf32>
      %181 = vector.extract_strided_slice %175 {offsets = [0, 1], sizes = [4, 1], strides = [1, 1]} : vector<4x4xf32> to vector<4x1xf32>
      %182 = vector.extract_strided_slice %141 {offsets = [1, 0], sizes = [1, 32], strides = [1, 1]} : vector<4x32xf32> to vector<1x32xf32>
      %183 = vector.broadcast %181 : vector<4x1xf32> to vector<4x32xf32>
      %184 = vector.broadcast %182 : vector<1x32xf32> to vector<4x32xf32>
      %185 = arith.mulf %183, %184 : vector<4x32xf32>
      %186 = arith.addf %180, %185 : vector<4x32xf32>
      %187 = vector.extract_strided_slice %175 {offsets = [0, 2], sizes = [4, 1], strides = [1, 1]} : vector<4x4xf32> to vector<4x1xf32>
      %188 = vector.extract_strided_slice %141 {offsets = [2, 0], sizes = [1, 32], strides = [1, 1]} : vector<4x32xf32> to vector<1x32xf32>
      %189 = vector.broadcast %187 : vector<4x1xf32> to vector<4x32xf32>
      %190 = vector.broadcast %188 : vector<1x32xf32> to vector<4x32xf32>
      %191 = arith.mulf %189, %190 : vector<4x32xf32>
      %192 = arith.addf %186, %191 : vector<4x32xf32>
      %193 = vector.extract_strided_slice %175 {offsets = [0, 3], sizes = [4, 1], strides = [1, 1]} : vector<4x4xf32> to vector<4x1xf32>
      %194 = vector.extract_strided_slice %141 {offsets = [3, 0], sizes = [1, 32], strides = [1, 1]} : vector<4x32xf32> to vector<1x32xf32>
      %195 = vector.broadcast %193 : vector<4x1xf32> to vector<4x32xf32>
      %196 = vector.broadcast %194 : vector<1x32xf32> to vector<4x32xf32>
      %197 = arith.mulf %195, %196 : vector<4x32xf32>
      %198 = arith.addf %192, %197 : vector<4x32xf32>
      %199 = arith.addf %173, %198 : vector<4x32xf32>
      %200 = vector.extract_strided_slice %142 {offsets = [2, 0, 0], sizes = [1, 4, 4], strides = [1, 1, 1]} : vector<3x4x4xf32> to vector<1x4x4xf32>
      %201 = vector.shape_cast %200 : vector<1x4x4xf32> to vector<4x4xf32>
      %202 = vector.extract_strided_slice %201 {offsets = [0, 0], sizes = [4, 1], strides = [1, 1]} : vector<4x4xf32> to vector<4x1xf32>
      %203 = vector.extract_strided_slice %148 {offsets = [0, 0], sizes = [1, 32], strides = [1, 1]} : vector<4x32xf32> to vector<1x32xf32>
      %204 = vector.broadcast %202 : vector<4x1xf32> to vector<4x32xf32>
      %205 = vector.broadcast %203 : vector<1x32xf32> to vector<4x32xf32>
      %206 = arith.mulf %204, %205 : vector<4x32xf32>
      %207 = vector.extract_strided_slice %201 {offsets = [0, 1], sizes = [4, 1], strides = [1, 1]} : vector<4x4xf32> to vector<4x1xf32>
      %208 = vector.extract_strided_slice %148 {offsets = [1, 0], sizes = [1, 32], strides = [1, 1]} : vector<4x32xf32> to vector<1x32xf32>
      %209 = vector.broadcast %207 : vector<4x1xf32> to vector<4x32xf32>
      %210 = vector.broadcast %208 : vector<1x32xf32> to vector<4x32xf32>
      %211 = arith.mulf %209, %210 : vector<4x32xf32>
      %212 = arith.addf %206, %211 : vector<4x32xf32>
      %213 = vector.extract_strided_slice %201 {offsets = [0, 2], sizes = [4, 1], strides = [1, 1]} : vector<4x4xf32> to vector<4x1xf32>
      %214 = vector.extract_strided_slice %148 {offsets = [2, 0], sizes = [1, 32], strides = [1, 1]} : vector<4x32xf32> to vector<1x32xf32>
      %215 = vector.broadcast %213 : vector<4x1xf32> to vector<4x32xf32>
      %216 = vector.broadcast %214 : vector<1x32xf32> to vector<4x32xf32>
      %217 = arith.mulf %215, %216 : vector<4x32xf32>
      %218 = arith.addf %212, %217 : vector<4x32xf32>
      %219 = vector.extract_strided_slice %201 {offsets = [0, 3], sizes = [4, 1], strides = [1, 1]} : vector<4x4xf32> to vector<4x1xf32>
      %220 = vector.extract_strided_slice %148 {offsets = [3, 0], sizes = [1, 32], strides = [1, 1]} : vector<4x32xf32> to vector<1x32xf32>
      %221 = vector.broadcast %219 : vector<4x1xf32> to vector<4x32xf32>
      %222 = vector.broadcast %220 : vector<1x32xf32> to vector<4x32xf32>
      %223 = arith.mulf %221, %222 : vector<4x32xf32>
      %224 = arith.addf %218, %223 : vector<4x32xf32>
      %225 = arith.addf %199, %224 : vector<4x32xf32>
      %226 = vector.broadcast %91 : vector<4x1xf32> to vector<4x32xf32>
      %227 = arith.mulf %225, %226 : vector<4x32xf32>
      %228 = vector.broadcast %94 : vector<4x1xf32> to vector<4x32xf32>
      %229 = arith.addf %227, %228 : vector<4x32xf32>
      %cst_42 = arith.constant 0.000000e+00 : f32
      %230 = vector.broadcast %cst_42 : f32 to vector<4x32xf32>
      %231 = arith.maximumf %229, %230 : vector<4x32xf32>
      %c0_43 = arith.constant 0 : index
      %c0_44 = arith.constant 0 : index
      %232 = vector.load %arg5[%c0_43, %c0_44] : memref<8x4xf32, #tpu.memory_space<vmem>>, vector<8x4xf32>
      %233 = vector.extract_strided_slice %232 {offsets = [0, 0], sizes = [8, 1], strides = [1, 1]} : vector<8x4xf32> to vector<8x1xf32>
      %234 = vector.extract_strided_slice %231 {offsets = [0, 0], sizes = [1, 32], strides = [1, 1]} : vector<4x32xf32> to vector<1x32xf32>
      %235 = vector.broadcast %233 : vector<8x1xf32> to vector<8x32xf32>
      %236 = vector.broadcast %234 : vector<1x32xf32> to vector<8x32xf32>
      %237 = arith.mulf %235, %236 : vector<8x32xf32>
      %238 = vector.extract_strided_slice %232 {offsets = [0, 1], sizes = [8, 1], strides = [1, 1]} : vector<8x4xf32> to vector<8x1xf32>
      %239 = vector.extract_strided_slice %231 {offsets = [1, 0], sizes = [1, 32], strides = [1, 1]} : vector<4x32xf32> to vector<1x32xf32>
      %240 = vector.broadcast %238 : vector<8x1xf32> to vector<8x32xf32>
      %241 = vector.broadcast %239 : vector<1x32xf32> to vector<8x32xf32>
      %242 = arith.mulf %240, %241 : vector<8x32xf32>
      %243 = arith.addf %237, %242 : vector<8x32xf32>
      %244 = vector.extract_strided_slice %232 {offsets = [0, 2], sizes = [8, 1], strides = [1, 1]} : vector<8x4xf32> to vector<8x1xf32>
      %245 = vector.extract_strided_slice %231 {offsets = [2, 0], sizes = [1, 32], strides = [1, 1]} : vector<4x32xf32> to vector<1x32xf32>
      %246 = vector.broadcast %244 : vector<8x1xf32> to vector<8x32xf32>
      %247 = vector.broadcast %245 : vector<1x32xf32> to vector<8x32xf32>
      %248 = arith.mulf %246, %247 : vector<8x32xf32>
      %249 = arith.addf %243, %248 : vector<8x32xf32>
      %250 = vector.extract_strided_slice %232 {offsets = [0, 3], sizes = [8, 1], strides = [1, 1]} : vector<8x4xf32> to vector<8x1xf32>
      %251 = vector.extract_strided_slice %231 {offsets = [3, 0], sizes = [1, 32], strides = [1, 1]} : vector<4x32xf32> to vector<1x32xf32>
      %252 = vector.broadcast %250 : vector<8x1xf32> to vector<8x32xf32>
      %253 = vector.broadcast %251 : vector<1x32xf32> to vector<8x32xf32>
      %254 = arith.mulf %252, %253 : vector<8x32xf32>
      %255 = arith.addf %249, %254 : vector<8x32xf32>
      %256 = vector.broadcast %57 : vector<8x1xf32> to vector<8x32xf32>
      %257 = arith.mulf %255, %256 : vector<8x32xf32>
      %258 = vector.broadcast %60 : vector<8x1xf32> to vector<8x32xf32>
      %259 = arith.addf %257, %258 : vector<8x32xf32>
      %c0_45 = arith.constant 0 : index
      %c0_46 = arith.constant 0 : index
      %260 = vector.load %arg6[%c0_45, %c0_46] : memref<8x4xf32, #tpu.memory_space<vmem>>, vector<8x4xf32>
      %261 = vector.extract_strided_slice %260 {offsets = [0, 0], sizes = [8, 1], strides = [1, 1]} : vector<8x4xf32> to vector<8x1xf32>
      %262 = vector.extract_strided_slice %5 {offsets = [0, 0], sizes = [1, 32], strides = [1, 1]} : vector<4x32xf32> to vector<1x32xf32>
      %263 = vector.broadcast %261 : vector<8x1xf32> to vector<8x32xf32>
      %264 = vector.broadcast %262 : vector<1x32xf32> to vector<8x32xf32>
      %265 = arith.mulf %263, %264 : vector<8x32xf32>
      %266 = vector.extract_strided_slice %260 {offsets = [0, 1], sizes = [8, 1], strides = [1, 1]} : vector<8x4xf32> to vector<8x1xf32>
      %267 = vector.extract_strided_slice %5 {offsets = [1, 0], sizes = [1, 32], strides = [1, 1]} : vector<4x32xf32> to vector<1x32xf32>
      %268 = vector.broadcast %266 : vector<8x1xf32> to vector<8x32xf32>
      %269 = vector.broadcast %267 : vector<1x32xf32> to vector<8x32xf32>
      %270 = arith.mulf %268, %269 : vector<8x32xf32>
      %271 = arith.addf %265, %270 : vector<8x32xf32>
      %272 = vector.extract_strided_slice %260 {offsets = [0, 2], sizes = [8, 1], strides = [1, 1]} : vector<8x4xf32> to vector<8x1xf32>
      %273 = vector.extract_strided_slice %5 {offsets = [2, 0], sizes = [1, 32], strides = [1, 1]} : vector<4x32xf32> to vector<1x32xf32>
      %274 = vector.broadcast %272 : vector<8x1xf32> to vector<8x32xf32>
      %275 = vector.broadcast %273 : vector<1x32xf32> to vector<8x32xf32>
      %276 = arith.mulf %274, %275 : vector<8x32xf32>
      %277 = arith.addf %271, %276 : vector<8x32xf32>
      %278 = vector.extract_strided_slice %260 {offsets = [0, 3], sizes = [8, 1], strides = [1, 1]} : vector<8x4xf32> to vector<8x1xf32>
      %279 = vector.extract_strided_slice %5 {offsets = [3, 0], sizes = [1, 32], strides = [1, 1]} : vector<4x32xf32> to vector<1x32xf32>
      %280 = vector.broadcast %278 : vector<8x1xf32> to vector<8x32xf32>
      %281 = vector.broadcast %279 : vector<1x32xf32> to vector<8x32xf32>
      %282 = arith.mulf %280, %281 : vector<8x32xf32>
      %283 = arith.addf %277, %282 : vector<8x32xf32>
      %284 = vector.broadcast %74 : vector<8x1xf32> to vector<8x32xf32>
      %285 = arith.mulf %283, %284 : vector<8x32xf32>
      %286 = vector.broadcast %77 : vector<8x1xf32> to vector<8x32xf32>
      %287 = arith.addf %285, %286 : vector<8x32xf32>
      %288 = arith.addf %259, %287 : vector<8x32xf32>
      %cst_47 = arith.constant 0.000000e+00 : f32
      %289 = vector.broadcast %cst_47 : f32 to vector<8x32xf32>
      %290 = arith.maximumf %288, %289 : vector<8x32xf32>
      %c0_48 = arith.constant 0 : index
      %c0_49 = arith.constant 0 : index
      %291 = vector.load %arg8[%c0_48, %c0_49] : memref<8x32xf32, #tpu.memory_space<vmem>>, vector<8x32xf32>
      tpu.vector_store %arg8[%c0_48, %c0_49], %290 {strides = array<i32>} : memref<8x32xf32, #tpu.memory_space<vmem>>, vector<8x32xf32>,
    } else {
    }
    return
  }
  func.func @transform_0(%arg0: i32, %arg1: i32) -> (i32, i32) {
    %c0_i32 = arith.constant 0 : i32
    %c0_i32_0 = arith.constant 0 : i32
    return %c0_i32, %arg1 : i32, i32
  }
  func.func @transform_1(%arg0: i32, %arg1: i32) -> (i32, i32) {
    %c0_i32 = arith.constant 0 : i32
    %c0_i32_0 = arith.constant 0 : i32
    %c0_i32_1 = arith.constant 0 : i32
    return %c0_i32, %c0_i32_0 : i32, i32
  }
  func.func @transform_2(%arg0: i32, %arg1: i32) -> (i32, i32, i32) {
    %c0_i32 = arith.constant 0 : i32
    %c0_i32_0 = arith.constant 0 : i32
    %c0_i32_1 = arith.constant 0 : i32
    %c0_i32_2 = arith.constant 0 : i32
    return %c0_i32, %c0_i32_0, %c0_i32_1 : i32, i32, i32
  }
  func.func @transform_3(%arg0: i32, %arg1: i32) -> (i32, i32) {
    %c0_i32 = arith.constant 0 : i32
    %c0_i32_0 = arith.constant 0 : i32
    %c0_i32_1 = arith.constant 0 : i32
    return %c0_i32, %c0_i32_0 : i32, i32
  }
  func.func @transform_4(%arg0: i32, %arg1: i32) -> (i32, i32) {
    %c0_i32 = arith.constant 0 : i32
    %c0_i32_0 = arith.constant 0 : i32
    %c0_i32_1 = arith.constant 0 : i32
    return %c0_i32, %c0_i32_0 : i32, i32
  }
  func.func @transform_5(%arg0: i32, %arg1: i32) -> (i32, i32) {
    %c0_i32 = arith.constant 0 : i32
    %c0_i32_0 = arith.constant 0 : i32
    %c0_i32_1 = arith.constant 0 : i32
    return %c0_i32, %c0_i32_0 : i32, i32
  }
  func.func @transform_6(%arg0: i32, %arg1: i32) -> (i32, i32) {
    %c3_i32 = arith.constant 3 : i32
    %0 = arith.cmpi eq, %arg0, %c3_i32 : i32
    %c0_i32 = arith.constant 0 : i32
    %1 = arith.select %0, %arg1, %c0_i32 : i32
    %c0_i32_0 = arith.constant 0 : i32
    %c0_i32_1 = arith.constant 0 : i32
    return %c0_i32_0, %1 : i32, i32
  }
}

</mosaic_0001>

<bundles_post_ra>
// kernel: tpu_custom_call.1
= control target key start
LH: loop header
LB: loop body
LE: loop exit
PB: predicated region body
PF: predicated region fallthrough
CT: control target
= control target key end

     0   :  { %11 = vsyncpa [#allocation7], 0  ;;  %s2126_s0 = inlined_call_operand.hbm [shape: f32[4,32], index: 0, kind: input, shape index: {}]   ;;  %s2127_s1 = inlined_call_operand.hbm [shape: f32[4,4], index: 1, kind: input, shape index: {}]   ;;  %s2128_s2 = inlined_call_operand.vmem [shape: f32[3,4,4], index: 2, kind: input, shape index: {}]   ;;  %s2129_s3 = inlined_call_operand.vmem [shape: f32[8,4], index: 3, kind: input, shape index: {}]   ;;  %s2130_s4 = inlined_call_operand.vmem [shape: f32[8,4], index: 4, kind: input, shape index: {}]   ;;  %s2131_s5 = inlined_call_operand.vmem [shape: f32[8,8], index: 5, kind: input, shape index: {}]   ;;  %s2132_s6 = inlined_call_operand.hbm [shape: f32[8,32], index: 6, kind: output, shape index: {}]  }
   0x1   :  { %12 = vsyncpa [#allocation10], 0 }
   0x2   :  { %13 = vsyncpa [#allocation8], 0 }
   0x3   :  { %15 = vsyncpa [#allocation8 + $0x1], 0  ;;  %s1807_s21 = smov 0   ;;  %s1809_s22 = smov 0  }
   0x4   :  { %s1811_s23 = smov 0  }
   0x5 LB: > { %s1391_s24 = sadd.s32 4294967295, %s1719_s23   ;;  %s1392_s25 = sadd.s32 4294967294, %s1719_s23   ;;  %s1719_s23 = sphi %s1811_s23, %s21_s23   ;;  %s1715_s22 = sphi %s1809_s22, %s2136_s22   ;;  %s1711_s21 = sphi %s1807_s21, %s2135_s21  }
   0x6   : > { %s33_s26 = sadd.s32 1, %s1715_s22  ;;  %p1393_p0 = scmp.ge.s32.totalorder %s1719_s23, 1 }
   0x7   : > { %p35_p1 = scmp.ge.s32.totalorder %s33_s26, 4  ;;  %p199_p2 = scmp.lt.s32.totalorder %s1719_s23, 5 }
   0x8   : > { %p1829_p3 = scmp.eq.s32.totalorder %s1391_s24, 0  ;;  %s213_s7 = sshll.u32 %s2126_s0, 4  ;;  %s214_s7 = int_to_ptr.hbm [resolvable:$true] %s213_s7 }
   0x9   : > { %s2138_s26 = smov (%p35_p1, %s33_s26), 0  ;;  %p1835_p4 = pnand %p1393_p0, %p199_p2 }
   0xa   : > { %s1721_s8 = smov [#allocation6]   ;;  %s225_s12 = sshll.u32 %s2127_s1, 4  ;;  %s226_s12 = int_to_ptr.hbm [resolvable:$true] %s225_s12 }
   0xb   : > { %p1423_p5 = pneg %p1835_p4  ;;  %s215_s9 = sshll.u32 %s1721_s8, 4  ;;  %s216_s9 = int_to_ptr.vmem [resolvable:$true] %s215_s9 }
   0xc   : > { %s1722_s13 = smov [#allocation9]   ;;  %252 = sbr.rel (%p1835_p4) target bundleno = 3465 (0xd89), region = 44 }
   0xd   : > { %p1424_p6 = pnand %p1829_p3, %p1423_p5  ;;  %s227_s14 = sshll.u32 %s1722_s13, 4  ;;  %s228_s14 = int_to_ptr.vmem [resolvable:$true] %s227_s14 }
   0xf   : > { %1426 = dma.hbm_to_vmem [thread:$0]  (!%p1424_p6), %s214_s7, 64, %s216_s9, [#allocation7]  }
  0x10   : > { %1429 = dma.hbm_to_vmem [thread:$0]  (!%p1424_p6), %s226_s12, 64, %s228_s14, [#allocation10]  }
  0x11   : > { %1698 = dma.done.wait (%p1829_p3), [#allocation7], 64  }
  0x12   : > { %1700 = vsyncadd (%p1829_p3), [#allocation7], 4294967232 }
  0x13   : > { %1702 = dma.done.wait (%p1829_p3), [#allocation10], 64  }
  0x14   : > { %1704 = vsyncadd (%p1829_p3), [#allocation10], 4294967232  ;;  %p285_p7 = scmp.eq.s32.totalorder %s1711_s21, 0 }
  0x15   : > { %vm291_vm0 = vcmask (%p285_p7), 11264   ;;  %vm294_vm1 = vcmask (%p285_p7), 15360   ;;  %v1723_v0 = vmov (%p285_p7), 0.0  }
  0x16   : > { %290 = sbr.rel (!%p285_p7) target bundleno = 27 (0x1b), region = 56  ;;  %292 = vst.msk [vmem:[#allocation2] sm:$0xf] (%p285_p7), %vm291_vm0, %v1723_v0 }
  0x17   : > { %293 = vst.msk [vmem:[#allocation3] sm:$0xf] (%p285_p7), %vm291_vm0, %v1723_v0 }
  0x18   : > { %295 = vst.msk [vmem:[#allocation4] sm:$0xff] (%p285_p7), %vm294_vm1, %v1723_v0 }
  0x19   : > { %296 = vst.msk [vmem:[#allocation5] sm:$0xff] (%p285_p7), %vm294_vm1, %v1723_v0 }
  0x1b PF: > { %v1860_v1 = vld [vmem:[#allocation6] sm:$0xf]  ;;  %v1865_v2 = vld [vmem:[%s2131_s5] sm:$0xff]  ;;  %v299_v3 = vlaneseq  ;;  %v1724_v6 = vmov 0.0   ;;  %p1402_p8 = scmp.ne.s32.totalorder %s1711_s21, 0 }
  0x1d   : > { %v300_v4 = vand.u32 127, %v299_v3 }
  0x1e   : > { %321 = sbr.rel (%p1402_p8) target bundleno = 298 (0x12a), region = 60 }
  0x1f   : > { %v305_v5 = vand.u32 15, %v300_v4 }
  0x21   : > { %vm313_vm2 = vcmp.ne.s32.totalorder %v305_v5, 0  ;;  %vm316_vm3 = vcmp.ne.s32.totalorder %v305_v5, 15 }
  0x22   : > { %v1867_v7 = vsel %vm313_vm2, 1.0, %v1724_v6  ;;  %v1869_v8 = vsel %vm316_vm3, 1.0, %v1724_v6 }
  0x23   : > { %v365_v9 = vld [vmem:[%s2130_s4] sm:$0xff]  ;;  %v322_v10 = vld [vmem:[#allocation9] sm:$0xf]  ;;  %v1725_v11 = vmov 0   ;;  %v1726_v12 = vmov 2   ;;  %v1727_v13 = vmov 1  }
  0x24   : > { %1518 = vset.pattern.permute.xlu1 %v1725_v11  ;;  %1516 = vset.pattern.permute.xlu0 %v1725_v11  ;;  %v1728_v14 = vmov 3   ;;  %v328_v19 = vperm.slane %v1860_v1, 0  ;;  %v334_v20 = vperm.slane %v1860_v1, 1  ;;  %v341_v21 = vperm.slane %v1860_v1, 2  ;;  %v359_v48 = vld [vmem:[#allocation2] sm:$0xf] }
  0x25   : > { %368 = vperm.xlu1 %1518, %v365_v9   ;;  %325 = vperm.xlu0 %1516, %v322_v10   ;;  %v348_v22 = vperm.slane %v1860_v1, 3  ;;  %vm390_vm4 = vcmask 261120   ;;  %vm351_vm5 = vcmask 257024   ;;  %vm360_vm6 = vcmask 7168   ;;  %v398_v51 = vld [vmem:[#allocation5] sm:$0xff] }
  0x26   : > { %1520 = vset.pattern.permute.xlu2 %v1726_v12  ;;  %vm363_vm7 = vcmask 11264   ;;  %vm401_vm8 = vcmask 15360  }
  0x27   : > { %338 = vperm.xlu2 %1520, %v322_v10  }
  0x2d   : > { %1519 = vset.pattern.permute.xlu1 %v1727_v13  ;;  %1517 = vset.pattern.permute.xlu0 %v1727_v13 }
  0x2e   : > { %373 = vperm.xlu1 %1519, %v365_v9   ;;  %331 = vperm.xlu0 %1517, %v322_v10  }
  0x2f   : > { %379 = vperm.xlu2 %1520, %v365_v9  }
  0x36   : > { %1521 = vset.pattern.permute.xlu1 %v1728_v14  ;;  %1523 = vset.pattern.permute.xlu0 %v1728_v14 }
  0x37   : > { %345 = vperm.xlu1 %1521, %v322_v10   ;;  %1522 = vset.pattern.permute.xlu2 %v1728_v14 }
  0x38   : > { %385 = vperm.xlu2 %1522, %v365_v9  }
  0x81   : > { %v339_v15 = vpop.permute.xlu2 %338 }
  0x82   : > { %v342_v36 = vmul.f32 %v341_v21, %v339_v15 }
  0x89   : > { %v380_v16 = vpop.permute.xlu2 %379 }
  0x8a   : > { %v382_v29 = vmul.f32 %v380_v16, %v341_v21 }
  0x92   : > { %v386_v23 = vpop.permute.xlu2 %385 }
  0x93   : > { %v388_v31 = vmul.f32 %v386_v23, %v348_v22 }
  0x97   : > { %v369_v17 = vpop.permute.xlu1 %368  ;;  %v326_v18 = vpop.permute.xlu0 %325 }
  0x98   : > { %v371_v26 = vmul.f32 %v369_v17, %v328_v19  ;;  %v329_v32 = vmul.f32 %v328_v19, %v326_v18 }
  0xa0   : > { %v374_v24 = vpop.permute.xlu1 %373  ;;  %v332_v25 = vpop.permute.xlu0 %331 }
  0xa1   : > { %v376_v27 = vmul.f32 %v374_v24, %v334_v20  ;;  %v335_v28 = vmul.f32 %v334_v20, %v332_v25 }
  0xa3   : > { %v377_v30 = vadd.f32 %v376_v27, %v371_v26  ;;  %v336_v34 = vadd.f32 %v335_v28, %v329_v32 }
  0xa5   : > { %v383_v33 = vadd.f32 %v382_v29, %v377_v30  ;;  %v343_v40 = vadd.f32 %v342_v36, %v336_v34 }
  0xa7   : > { %v389_v35 = vadd.f32 %v388_v31, %v383_v33 }
  0xa9   : > { %v346_v37 = vpop.permute.xlu1 %345  ;;  %v391_v38 = vsel %vm390_vm4, %v389_v35, 0.0  ;;  %v394_v42 = vmul.f32 %v389_v35, %v389_v35 }
  0xaa   : > { %v349_v39 = vmul.f32 %v348_v22, %v346_v37  ;;  %392 = vadd.xlane.f32.xlu2 %v391_v38 }
  0xab   : > { %v395_v46 = vsel %vm390_vm4, %v394_v42, 0.0 }
  0xac   : > { %v350_v41 = vadd.f32 %v349_v39, %v343_v40 }
  0xae   : > { %v352_v43 = vsel %vm351_vm5, %v350_v41, 0.0  ;;  %v355_v44 = vmul.f32 %v350_v41, %v350_v41 }
  0xaf   : > { %353 = vadd.xlane.f32.xlu0 %v352_v43 }
  0xb0   : > { %v356_v45 = vsel %vm351_vm5, %v355_v44, 0.0 }
  0xb1   : > { %357 = vadd.xlane.f32.xlu1 %v356_v45 }
  0xb2   : > { %396 = vadd.xlane.f32.xlu2 %v395_v46 }
 0x11d   : > { %v393_v47 = vpop.xlane.xlu2 %392 }
 0x122   : > { %v354_v49 = vpop.xlane.xlu0 %353 }
 0x124   : > { %v358_v50 = vpop.xlane.xlu1 %357 }
 0x125   : > { %v361_v52 = vsel %vm360_vm6, %v354_v49, %v358_v50  ;;  %v397_v53 = vpop.xlane.xlu2 %396 }
 0x126   : > { %v362_v54 = vadd.f32 %v361_v52, %v359_v48  ;;  %v399_v55 = vsel %vm360_vm6, %v393_v47, %v397_v53 }
 0x127   : > { %v400_v56 = vadd.f32 %v399_v55, %v398_v51 }
 0x128   : > { %364 = vst.msk [vmem:[#allocation2] sm:$0xf] %vm363_vm7, %v362_v54 }
 0x129   : > { %402 = vst.msk [vmem:[#allocation5] sm:$0xff] %vm401_vm8, %v400_v56 }
 0x12a PF: > { %p1403_p9 = scmp.ne.s32.totalorder %s1711_s21, 1 }
 0x12b   : > { %s1729_s19 = smov (!%p1403_p9), 1   ;;  %s1730_s20 = smov (!%p1403_p9), 127  }
 0x12c   : > { %406 = sbr.rel (%p1403_p9) target bundleno = 1330 (0x532), region = 64  ;;  %s1735_s7 = smov (!%p1403_p9), 32  }
 0x12d   : > { %s1736_s10 = smov (!%p1403_p9), 31   ;;  %s1737_s11 = smov (!%p1403_p9), 30  }
 0x12e   : > { %s1738_s12 = smov (!%p1403_p9), 97  }
 0x131   : > { %v407_v57 = vld [vmem:[#allocation2] sm:$0xf]  ;;  %v1731_v10 = vmov 0   ;;  %v437_v11 = vld [vmem:[#allocation9] sm:$0xf]  ;;  %v1732_v12 = vmov 3  }
 0x132   : > { %v408_v58 = vmul.f32 0.03125, %v407_v57  ;;  %1524 = vset.pattern.permute.xlu1 %v1731_v10  ;;  %1527 = vset.pattern.permute.xlu0 %v1732_v12  ;;  %v1733_v13 = vmov 1   ;;  %v1734_v14 = vmov 2   ;;  %v480_v15 = vld [vmem:[%s2128_s2 + $0x4] sm:$0xf]  ;;  %v449_v23 = vperm.slane %v1860_v1, 1 }
 0x133   : > { %1525 = vset.pattern.permute.xlu2 %v1733_v13  ;;  %v481_v19 = vld [vmem:[%s2128_s2 + $0x8] sm:$0xf]  ;;  %v443_v24 = vperm.slane %v1860_v1, 0  ;;  %v456_v28 = vperm.slane %v1860_v1, 2  ;;  %v463_v32 = vperm.slane %v1860_v1, 3  ;;  %vm482_vm12 = vcmask 1047808  }
 0x134   : > { %v409_v59 = vmul.f32 %v408_v58, %v408_v58  ;;  %446 = vperm.xlu2 %1525, %v437_v11   ;;  %v479_v42 = vld [vmem:[%s2128_s2] sm:$0xf]  ;;  %vm597_vm13 = vcmask 257024   ;;  %vm610_vm14 = vcmask 7168   ;;  %vm613_vm15 = vcmask 11264  }
 0x136   : > { %411 = vrot.lane.b32.xlu0 %v409_v59, %s1729_s19 }
 0x13c   : > { %1526 = vset.pattern.permute.xlu2 %v1734_v14 }
 0x13d   : > { %453 = vperm.xlu2 %1526, %v437_v11  }
 0x145   : > { %1528 = vset.pattern.permute.xlu2 %v1733_v13 }
 0x18e   : > { %v447_v22 = vpop.permute.xlu2 %446 }
 0x18f   : > { %v450_v26 = vmul.f32 %v449_v23, %v447_v22 }
 0x197   : > { %v454_v29 = vpop.permute.xlu2 %453 }
 0x198   : > { %v457_v31 = vmul.f32 %v456_v28, %v454_v29 }
 0x1a8   : > { %v412_v60 = vpop.permute.xlu0 %411 }
 0x1a9   : > { %v414_v61 = vsub.f32 %v408_v58, %v412_v60 }
 0x1ab   : > { %v415_v62 = vadd.f32 1e-05, %v414_v61 }
 0x1ad   : > { %1536 = vrsqrt.f32 %v415_v62  ;;  %vm422_vm10 = vweird.f32 %v415_v62 }
 0x1b3   : > { %v1537_v63 = vpop.eup %1536 }
 0x1b4   : > { %v417_v0 = vmul.f32 %v1537_v63, %v415_v62  ;;  %vm423_vm9 = vweird.f32 %v1537_v63 }
 0x1b5   : > { %vm424_vm11 = vmor %vm422_vm10, %vm423_vm9 }
 0x1b6   : > { %v418_v3 = vmul.f32 %v1537_v63, %v417_v0 }
 0x1b8   : > { %v419_v4 = vmul.f32 0.5, %v418_v3 }
 0x1ba   : > { %v420_v5 = vsub.f32 1.5, %v419_v4 }
 0x1bc   : > { %v421_v6 = vmul.f32 %v1537_v63, %v420_v5 }
 0x1be   : > { %v425_v9 = vsel %vm424_vm11, %v1537_v63, %v421_v6 }
 0x1bf   : > { %427 = vrot.lane.b32.xlu0 %v425_v9, %s1730_s20 }
 0x1c7   : > { %460 = vperm.xlu0 %1527, %v437_v11  }
 0x1cf   : > { %495 = vrot.lane.b32.xlu0 %v1869_v8, %s1729_s19 }
 0x1d0   : > { %1529 = vset.pattern.permute.xlu0 %v1734_v14 }
 0x1d7   : > { %542 = vperm.xlu0 %1529, %v480_v15  }
 0x1df   : > { %1532 = vset.pattern.permute.xlu0 %v1732_v12 }
 0x1e0   : > { %582 = vperm.xlu0 %1532, %v481_v19  }
 0x1e8   : > { %521 = vperm.xlu0 %1532, %v479_v42  }
 0x231   : > { %v428_v16 = vpop.permute.xlu0 %427 }
 0x232   : > { %v430_v17 = vmul.f32 %v428_v16, %v1865_v2 }
 0x234   : > { %v431_v18 = vmul.f32 %v430_v17, %v408_v58 }
 0x236   : > { %433 = vrot.lane.b32.xlu1 %v431_v18, %s1729_s19 }
 0x239   : > { %v461_v33 = vpop.permute.xlu0 %460 }
 0x23a   : > { %v464_v35 = vmul.f32 %v463_v32, %v461_v33 }
 0x23e   : > { %440 = vperm.xlu1 %1524, %v437_v11  }
 0x241   : > { %v496_v46 = vpop.permute.xlu0 %495 }
 0x246   : > { %468 = vperm.xlu1 %1524, %v430_v17  }
 0x249   : > { %v543_v54 = vpop.permute.xlu0 %542 }
 0x252   : > { %v583_v16 = vpop.permute.xlu0 %582 }
 0x25a   : > { %v522_v32 = vpop.permute.xlu0 %521 }
 0x2a8   : > { %v434_v20 = vpop.permute.xlu1 %433 }
 0x2a9   : > { %v436_v21 = vsub.f32 %v1865_v2, %v434_v20 }
 0x2ab   : > { %474 = vperm.xlu2 %1528, %v436_v21  }
 0x2b0   : > { %v441_v25 = vpop.permute.xlu1 %440 }
 0x2b1   : > { %v444_v27 = vmul.f32 %v443_v24, %v441_v25 }
 0x2b3   : > { %535 = vperm.xlu2 %1528, %v480_v15   ;;  %v451_v30 = vadd.f32 %v450_v26, %v444_v27 }
 0x2b5   : > { %v458_v34 = vadd.f32 %v457_v31, %v451_v30 }
 0x2b7   : > { %v465_v36 = vadd.f32 %v464_v35, %v458_v34 }
 0x2b8   : > { %v469_v37 = vpop.permute.xlu1 %468 }
 0x2b9   : > { %v471_v38 = vmul.f32 %v469_v37, %v465_v36 }
 0x2bb   : > { %568 = vperm.xlu2 %1528, %v481_v19  }
 0x2c3   : > { %1531 = vset.pattern.permute.xlu2 %v1734_v14 }
 0x305   : > { %v475_v39 = vpop.permute.xlu2 %474 }
 0x306   : > { %v477_v40 = vadd.f32 %v475_v39, %v471_v38 }
 0x308   : > { %v478_v41 = vmax.f32 %v477_v40, 0.0 }
 0x30a   : > { %483 = vrot.lane.b32.xlu1 %v478_v41, %s1735_s7  ;;  %v532_v47 = vperm.slane %v478_v41, 0  ;;  %v538_v50 = vperm.slane %v478_v41, 1  ;;  %v545_v52 = vperm.slane %v478_v41, 2  ;;  %v552_v57 = vperm.slane %v478_v41, 3 }
 0x30c   : > { %v546_v56 = vmul.f32 %v545_v52, %v543_v54 }
 0x30d   : > { %v536_v49 = vpop.permute.xlu2 %535 }
 0x30e   : > { %v539_v53 = vmul.f32 %v538_v50, %v536_v49 }
 0x312   : > { %529 = vperm.xlu1 %1524, %v480_v15  }
 0x315   : > { %v569_v62 = vpop.permute.xlu2 %568 }
 0x31a   : > { %562 = vperm.xlu1 %1524, %v481_v19  }
 0x322   : > { %1530 = vset.pattern.permute.xlu1 %v1732_v12 }
 0x323   : > { %549 = vperm.xlu1 %1530, %v480_v15  }
 0x32b   : > { %490 = vrot.lane.b32.xlu1 %v1867_v7, %s1736_s10 }
 0x32c   : > { %1534 = vset.pattern.permute.xlu1 %v1733_v13 }
 0x333   : > { %507 = vperm.xlu1 %1534, %v479_v42  }
 0x37c   : > { %v484_v43 = vpop.permute.xlu1 %483 }
 0x37d   : > { %v485_v44 = vsel %vm482_vm12, %v484_v43, %v478_v41 }
 0x37e   : > { %486 = vrot.lane.b32.xlu2 %v485_v44, %s1735_s7 }
 0x384   : > { %v530_v45 = vpop.permute.xlu1 %529 }
 0x385   : > { %v533_v51 = vmul.f32 %v532_v47, %v530_v45  ;;  %v609_v45 = vld [vmem:[#allocation3] sm:$0xf] }
 0x386   : > { %575 = vperm.xlu2 %1531, %v481_v19  }
 0x387   : > { %v540_v55 = vadd.f32 %v539_v53, %v533_v51 }
 0x389   : > { %v547_v59 = vadd.f32 %v546_v56, %v540_v55 }
 0x38c   : > { %v563_v48 = vpop.permute.xlu1 %562 }
 0x38e   : > { %1533 = vset.pattern.permute.xlu2 %v1731_v10 }
 0x38f   : > { %501 = vperm.xlu2 %1533, %v479_v42  }
 0x395   : > { %v550_v58 = vpop.permute.xlu1 %549 }
 0x396   : > { %v553_v60 = vmul.f32 %v552_v57, %v550_v58 }
 0x397   : > { %1535 = vset.pattern.permute.xlu2 %v1734_v14 }
 0x398   : > { %v554_v61 = vadd.f32 %v553_v60, %v547_v59  ;;  %514 = vperm.xlu2 %1535, %v479_v42  }
 0x39a   : > { %556 = vrot.lane.b32.xlu1 %v554_v61, %s1736_s10 }
 0x39d   : > { %v491_v19 = vpop.permute.xlu1 %490 }
 0x3a5   : > { %v508_v24 = vpop.permute.xlu1 %507 }
 0x3d8   : > { %v487_v63 = vpop.permute.xlu2 %486 }
 0x3d9   : > { %v488_v0 = vsel %vm482_vm12, %v487_v63, %v478_v41 }
 0x3da   : > { %v498_v3 = vmul.f32 %v496_v46, %v488_v0  ;;  %v493_v21 = vmul.f32 %v491_v19, %v488_v0 }
 0x3dc   : > { %v565_v4 = vperm.slane %v498_v3, 0  ;;  %v571_v5 = vperm.slane %v498_v3, 1  ;;  %v578_v10 = vperm.slane %v498_v3, 2  ;;  %v585_v11 = vperm.slane %v498_v3, 3 }
 0x3dd   : > { %v510_v22 = vperm.slane %v493_v21, 1  ;;  %v504_v23 = vperm.slane %v493_v21, 0  ;;  %v517_v27 = vperm.slane %v493_v21, 2  ;;  %v524_v30 = vperm.slane %v493_v21, 3 }
 0x3de   : > { %v566_v6 = vmul.f32 %v565_v4, %v563_v48  ;;  %v572_v9 = vmul.f32 %v571_v5, %v569_v62  ;;  %v586_v14 = vmul.f32 %v585_v11, %v583_v16 }
 0x3df   : > { %v511_v28 = vmul.f32 %v510_v22, %v508_v24  ;;  %v525_v34 = vmul.f32 %v524_v30, %v522_v32 }
 0x3e0   : > { %v576_v12 = vpop.permute.xlu2 %575  ;;  %v573_v13 = vadd.f32 %v572_v9, %v566_v6 }
 0x3e1   : > { %v579_v15 = vmul.f32 %v578_v10, %v576_v12 }
 0x3e3   : > { %v580_v17 = vadd.f32 %v579_v15, %v573_v13 }
 0x3e5   : > { %v587_v18 = vadd.f32 %v586_v14, %v580_v17 }
 0x3e7   : > { %589 = vrot.lane.b32.xlu2 %v587_v18, %s1737_s11 }
 0x3e9   : > { %v502_v20 = vpop.permute.xlu2 %501 }
 0x3ea   : > { %v505_v26 = vmul.f32 %v504_v23, %v502_v20 }
 0x3ec   : > { %v512_v31 = vadd.f32 %v511_v28, %v505_v26 }
 0x3f2   : > { %v515_v25 = vpop.permute.xlu2 %514 }
 0x3f3   : > { %v518_v29 = vmul.f32 %v517_v27, %v515_v25 }
 0x3f5   : > { %v519_v33 = vadd.f32 %v518_v29, %v512_v31 }
 0x3f7   : > { %v526_v36 = vadd.f32 %v525_v34, %v519_v33 }
 0x40c   : > { %v557_v35 = vpop.permute.xlu1 %556 }
 0x40d   : > { %v559_v37 = vadd.f32 %v557_v35, %v526_v36 }
 0x441   : > { %v590_v38 = vpop.permute.xlu2 %589 }
 0x442   : > { %v592_v39 = vadd.f32 %v590_v38, %v559_v37 }
 0x444   : > { %v601_v40 = vmul.f32 %v592_v39, %v592_v39  ;;  %594 = vrot.lane.b32.xlu0 %v592_v39, %s1738_s12 }
 0x446   : > { %603 = vrot.lane.b32.xlu1 %v601_v40, %s1738_s12 }
 0x4b6   : > { %v595_v41 = vpop.permute.xlu0 %594 }
 0x4b7   : > { %v598_v42 = vsel %vm597_vm13, %v595_v41, 0.0 }
 0x4b8   : > { %599 = vadd.xlane.f32.xlu2 %v598_v42  ;;  %v604_v43 = vpop.permute.xlu1 %603 }
 0x4b9   : > { %v606_v44 = vsel %vm597_vm13, %v604_v43, 0.0 }
 0x4ba   : > { %607 = vadd.xlane.f32.xlu0 %v606_v44 }
 0x52b   : > { %v600_v46 = vpop.xlane.xlu2 %599 }
 0x52d   : > { %v608_v47 = vpop.xlane.xlu0 %607 }
 0x52e   : > { %v611_v48 = vsel %vm610_vm14, %v600_v46, %v608_v47 }
 0x52f   : > { %v612_v49 = vadd.f32 %v611_v48, %v609_v45 }
 0x531   : > { %614 = vst.msk [vmem:[#allocation3] sm:$0xf] %vm613_vm15, %v612_v49 }
 0x532 PF: > { %p1404_p10 = scmp.ne.s32.totalorder %s1711_s21, 2 }
 0x533   : > { %s1739_s13 = smov (!%p1404_p10), 1   ;;  %s1742_s14 = smov (!%p1404_p10), 127  }
 0x534   : > { %618 = sbr.rel (%p1404_p10) target bundleno = 2434 (0x982), region = 68  ;;  %s1745_s17 = smov (!%p1404_p10), 126  }
 0x535   : > { %s1746_s20 = smov (!%p1404_p10), 32   ;;  %s1747_s27 = smov (!%p1404_p10), 3  }
 0x536   : > { %s1748_s30 = smov (!%p1404_p10), 31   ;;  %s1749_s9 = smov (!%p1404_p10), 30  }
 0x537   : > { %s1750_s10 = smov (!%p1404_p10), 97  }
 0x539   : > { %v653_v50 = vld [vmem:[#allocation2] sm:$0xf]  ;;  %v619_v53 = vld [vmem:[#allocation3] sm:$0xf]  ;;  %v683_v54 = vld [vmem:[#allocation9] sm:$0xf] }
 0x53a   : > { %v654_v51 = vmul.f32 0.03125, %v653_v50  ;;  %v1912_v55 = vmul.f32 0.03125, %v619_v53  ;;  %v1740_v56 = vmov 0   ;;  %v1741_v60 = vmov 1   ;;  %v726_v25 = vld [vmem:[%s2128_s2 + $0x4] sm:$0xf] }
 0x53b   : > { %1538 = vset.pattern.permute.xlu2 %v1740_v56  ;;  %v1743_v9 = vmov 2   ;;  %v1744_v10 = vmov 3   ;;  %v689_v27 = vperm.slane %v1860_v1, 0  ;;  %v695_v28 = vperm.slane %v1860_v1, 1  ;;  %v727_v46 = vld [vmem:[%s2128_s2 + $0x8] sm:$0xf] }
 0x53c   : > { %v655_v52 = vmul.f32 %v654_v51, %v654_v51  ;;  %686 = vperm.xlu2 %1538, %v683_v54   ;;  %v621_v57 = vmul.f32 %v1912_v55, %v1912_v55  ;;  %1540 = vset.pattern.permute.xlu0 %v1743_v9  ;;  %v702_v32 = vperm.slane %v1860_v1, 2  ;;  %v709_v39 = vperm.slane %v1860_v1, 3 }
 0x53d   : > { %1541 = vset.pattern.permute.xlu1 %v1744_v10  ;;  %vm728_vm6 = vcmask 1047808   ;;  %vm884_vm7 = vcmask 261120   ;;  %vm897_vm8 = vcmask 7168   ;;  %vm900_vm9 = vcmask 15360  }
 0x53e   : > { %657 = vrot.lane.b32.xlu0 %v655_v52, %s1739_s13  ;;  %623 = vrot.lane.b32.xlu1 %v621_v57, %s1739_s13  ;;  %v725_v52 = vld [vmem:[%s2128_s2] sm:$0xf] }
 0x544   : > { %1539 = vset.pattern.permute.xlu2 %v1741_v60 }
 0x545   : > { %692 = vperm.xlu2 %1539, %v683_v54  }
 0x54d   : > { %1542 = vset.pattern.permute.xlu2 %v1740_v56 }
 0x596   : > { %v687_v24 = vpop.permute.xlu2 %686 }
 0x597   : > { %v690_v30 = vmul.f32 %v689_v27, %v687_v24 }
 0x59f   : > { %v693_v26 = vpop.permute.xlu2 %692 }
 0x5a0   : > { %v696_v31 = vmul.f32 %v695_v28, %v693_v26 }
 0x5a2   : > { %v697_v36 = vadd.f32 %v696_v31, %v690_v30 }
 0x5b0   : > { %v658_v58 = vpop.permute.xlu0 %657  ;;  %v624_v11 = vpop.permute.xlu1 %623 }
 0x5b1   : > { %v660_v59 = vsub.f32 %v654_v51, %v658_v58  ;;  %v626_v12 = vsub.f32 %v1912_v55, %v624_v11 }
 0x5b3   : > { %v661_v61 = vadd.f32 1e-05, %v660_v59  ;;  %v627_v13 = vadd.f32 1e-05, %v626_v12 }
 0x5b5   : > { %1558 = vrsqrt.f32 %v661_v61  ;;  %vm668_vm1 = vweird.f32 %v661_v61  ;;  %vm634_vm3 = vweird.f32 %v627_v13 }
 0x5b6   : > { %1560 = vrsqrt.f32 %v627_v13 }
 0x5bb   : > { %v1559_v62 = vpop.eup %1558 }
 0x5bc   : > { %v663_v63 = vmul.f32 %v1559_v62, %v661_v61  ;;  %vm669_vm0 = vweird.f32 %v1559_v62  ;;  %v1561_v15 = vpop.eup %1560 }
 0x5bd   : > { %vm670_vm2 = vmor %vm668_vm1, %vm669_vm0  ;;  %v629_v16 = vmul.f32 %v1561_v15, %v627_v13  ;;  %vm635_vm4 = vweird.f32 %v1561_v15 }
 0x5be   : > { %v664_v0 = vmul.f32 %v1559_v62, %v663_v63  ;;  %vm636_vm5 = vmor %vm634_vm3, %vm635_vm4 }
 0x5bf   : > { %v630_v17 = vmul.f32 %v1561_v15, %v629_v16 }
 0x5c0   : > { %v665_v3 = vmul.f32 0.5, %v664_v0 }
 0x5c1   : > { %v631_v14 = vmul.f32 0.5, %v630_v17 }
 0x5c2   : > { %v666_v4 = vsub.f32 1.5, %v665_v3 }
 0x5c3   : > { %v632_v19 = vsub.f32 1.5, %v631_v14  ;;  %v851_v14 = vld [vmem:[%s2129_s3] sm:$0xff] }
 0x5c4   : > { %v667_v5 = vmul.f32 %v1559_v62, %v666_v4 }
 0x5c5   : > { %v633_v22 = vmul.f32 %v1561_v15, %v632_v19 }
 0x5c6   : > { %v671_v6 = vsel %vm670_vm2, %v1559_v62, %v667_v5 }
 0x5c7   : > { %673 = vrot.lane.b32.xlu0 %v671_v6, %s1742_s14  ;;  %v637_v23 = vsel %vm636_vm5, %v1561_v15, %v633_v22 }
 0x5cf   : > { %699 = vperm.xlu0 %1540, %v683_v54  }
 0x639   : > { %v674_v18 = vpop.permute.xlu0 %673 }
 0x63a   : > { %v676_v20 = vmul.f32 %v674_v18, %v1865_v2 }
 0x63c   : > { %v677_v21 = vmul.f32 %v676_v20, %v654_v51  ;;  %714 = vperm.xlu2 %1542, %v676_v20  }
 0x63e   : > { %679 = vrot.lane.b32.xlu1 %v677_v21, %s1739_s13 }
 0x641   : > { %v700_v34 = vpop.permute.xlu0 %699 }
 0x642   : > { %v703_v37 = vmul.f32 %v702_v32, %v700_v34 }
 0x644   : > { %639 = vrot.lane.b32.xlu2 %v637_v23, %s1739_s13  ;;  %v704_v40 = vadd.f32 %v703_v37, %v697_v36 }
 0x645   : > { %1545 = vset.pattern.permute.xlu2 %v1741_v60 }
 0x646   : > { %706 = vperm.xlu1 %1541, %v683_v54  }
 0x64c   : > { %781 = vperm.xlu2 %1545, %v726_v25  }
 0x64e   : > { %1543 = vset.pattern.permute.xlu1 %v1741_v60 }
 0x696   : > { %v715_v29 = vpop.permute.xlu2 %714 }
 0x69e   : > { %v640_v38 = vpop.permute.xlu2 %639 }
 0x69f   : > { %v642_v41 = vmul.f32 %v640_v38, %v1865_v2 }
 0x6a6   : > { %v782_v61 = vpop.permute.xlu2 %781 }
 0x6b0   : > { %v680_v33 = vpop.permute.xlu1 %679 }
 0x6b1   : > { %v682_v35 = vsub.f32 %v1865_v2, %v680_v33 }
 0x6b3   : > { %720 = vperm.xlu1 %1543, %v682_v35  }
 0x6b8   : > { %v707_v42 = vpop.permute.xlu1 %706 }
 0x6b9   : > { %v710_v43 = vmul.f32 %v709_v39, %v707_v42 }
 0x6bb   : > { %v711_v44 = vadd.f32 %v710_v43, %v704_v40  ;;  %644 = vrot.lane.b32.xlu1 %v642_v41, %s1745_s17 }
 0x6bc   : > { %1544 = vset.pattern.permute.xlu1 %v1740_v56 }
 0x6bd   : > { %v717_v45 = vmul.f32 %v715_v29, %v711_v44 }
 0x6c3   : > { %775 = vperm.xlu1 %1544, %v726_v25  }
 0x6cb   : > { %808 = vperm.xlu1 %1544, %v727_v46  }
 0x6d3   : > { %1547 = vset.pattern.permute.xlu1 %v1743_v9 }
 0x6d4   : > { %821 = vperm.xlu1 %1547, %v727_v46  }
 0x6dc   : > { %1550 = vset.pattern.permute.xlu1 %v1741_v60 }
 0x725   : > { %v721_v47 = vpop.permute.xlu1 %720 }
 0x726   : > { %v723_v48 = vadd.f32 %v721_v47, %v717_v45 }
 0x728   : > { %v724_v49 = vmax.f32 %v723_v48, 0.0 }
 0x72a   : > { %729 = vrot.lane.b32.xlu0 %v724_v49, %s1746_s20  ;;  %v791_v63 = vperm.slane %v724_v49, 2  ;;  %v798_v5 = vperm.slane %v724_v49, 3 }
 0x72d   : > { %v645_v50 = vpop.permute.xlu1 %644 }
 0x72e   : > { %v647_v51 = vmul.f32 %v645_v50, %v1912_v55 }
 0x730   : > { %649 = vrot.lane.b32.xlu1 %v647_v51, %s1747_s27 }
 0x732   : > { %741 = vrot.lane.b32.xlu0 %v1869_v8, %s1739_s13 }
 0x735   : > { %v776_v57 = vpop.permute.xlu1 %775 }
 0x738   : > { %753 = vperm.xlu1 %1550, %v725_v52  }
 0x73a   : > { %788 = vperm.xlu0 %1540, %v726_v25  }
 0x73d   : > { %v809_v59 = vpop.permute.xlu1 %808 }
 0x740   : > { %1552 = vset.pattern.permute.xlu1 %v1744_v10 }
 0x741   : > { %767 = vperm.xlu1 %1552, %v725_v52  }
 0x742   : > { %1546 = vset.pattern.permute.xlu0 %v1744_v10 }
 0x743   : > { %795 = vperm.xlu0 %1546, %v726_v25  }
 0x746   : > { %v822_v6 = vpop.permute.xlu1 %821 }
 0x749   : > { %1553 = vset.pattern.permute.xlu1 %v1743_v9 }
 0x74a   : > { %840 = vperm.xlu1 %1553, %v642_v41  }
 0x74b   : > { %1549 = vset.pattern.permute.xlu0 %v1740_v56  ;;  %v784_v56 = vperm.slane %v724_v49, 1 }
 0x74c   : > { %747 = vperm.xlu0 %1549, %v725_v52  }
 0x74d   : > { %v785_v3 = vmul.f32 %v784_v56, %v782_v61 }
 0x752   : > { %1555 = vset.pattern.permute.xlu1 %v1741_v60  ;;  %v778_v60 = vperm.slane %v724_v49, 0 }
 0x753   : > { %860 = vperm.xlu1 %1555, %v851_v14  }
 0x754   : > { %v779_v62 = vmul.f32 %v778_v60, %v776_v57 }
 0x756   : > { %v786_v11 = vadd.f32 %v785_v3, %v779_v62 }
 0x79c   : > { %v730_v53 = vpop.permute.xlu0 %729 }
 0x79d   : > { %v731_v54 = vsel %vm728_vm6, %v730_v53, %v724_v49 }
 0x79e   : > { %732 = vrot.lane.b32.xlu2 %v731_v54, %s1746_s20 }
 0x7a2   : > { %v650_v16 = vpop.permute.xlu1 %649 }
 0x7a3   : > { %v652_v17 = vsub.f32 %v1865_v2, %v650_v16 }
 0x7a4   : > { %v742_v55 = vpop.permute.xlu0 %741 }
 0x7a6   : > { %814 = vperm.xlu2 %1545, %v727_v46  }
 0x7aa   : > { %v754_v35 = vpop.permute.xlu1 %753 }
 0x7ac   : > { %v789_v58 = vpop.permute.xlu0 %788 }
 0x7ad   : > { %v792_v4 = vmul.f32 %v791_v63, %v789_v58 }
 0x7ae   : > { %1548 = vset.pattern.permute.xlu2 %v1744_v10 }
 0x7af   : > { %828 = vperm.xlu2 %1548, %v727_v46   ;;  %v793_v13 = vadd.f32 %v792_v4, %v786_v11 }
 0x7b3   : > { %v768_v44 = vpop.permute.xlu1 %767 }
 0x7b5   : > { %v796_v0 = vpop.permute.xlu0 %795 }
 0x7b6   : > { %v799_v12 = vmul.f32 %v798_v5, %v796_v0 }
 0x7b7   : > { %736 = vrot.lane.b32.xlu2 %v1867_v7, %s1748_s30 }
 0x7b8   : > { %1551 = vset.pattern.permute.xlu2 %v1743_v9  ;;  %v800_v15 = vadd.f32 %v799_v12, %v793_v13 }
 0x7bc   : > { %v841_v51 = vpop.permute.xlu1 %840 }
 0x7be   : > { %v748_v38 = vpop.permute.xlu0 %747 }
 0x7bf   : > { %760 = vperm.xlu2 %1551, %v725_v52  }
 0x7c5   : > { %v861_v56 = vpop.permute.xlu1 %860 }
 0x7c7   : > { %802 = vrot.lane.b32.xlu2 %v800_v15, %s1748_s30 }
 0x7c8   : > { %1554 = vset.pattern.permute.xlu2 %v1744_v10 }
 0x7cf   : > { %846 = vperm.xlu2 %1554, %v652_v17  }
 0x7d7   : > { %1556 = vset.pattern.permute.xlu2 %v1743_v9 }
 0x7d8   : > { %867 = vperm.xlu2 %1556, %v851_v14  }
 0x7f8   : > { %v733_v18 = vpop.permute.xlu2 %732 }
 0x7f9   : > { %v734_v19 = vsel %vm728_vm6, %v733_v18, %v724_v49 }
 0x7fa   : > { %v744_v20 = vmul.f32 %v742_v55, %v734_v19 }
 0x7fc   : > { %v811_v22 = vperm.slane %v744_v20, 0  ;;  %v817_v23 = vperm.slane %v744_v20, 1  ;;  %v824_v26 = vperm.slane %v744_v20, 2  ;;  %v831_v29 = vperm.slane %v744_v20, 3  ;;  %v896_v20 = vld [vmem:[#allocation4] sm:$0xff] }
 0x7fe   : > { %v812_v25 = vmul.f32 %v811_v22, %v809_v59  ;;  %v825_v28 = vmul.f32 %v824_v26, %v822_v6 }
 0x800   : > { %v815_v21 = vpop.permute.xlu2 %814 }
 0x801   : > { %v818_v24 = vmul.f32 %v817_v23, %v815_v21 }
 0x803   : > { %v819_v27 = vadd.f32 %v818_v24, %v812_v25 }
 0x805   : > { %v826_v30 = vadd.f32 %v825_v28, %v819_v27 }
 0x809   : > { %v829_v9 = vpop.permute.xlu2 %828 }
 0x80a   : > { %v832_v31 = vmul.f32 %v831_v29, %v829_v9 }
 0x80c   : > { %v833_v32 = vadd.f32 %v832_v31, %v826_v30 }
 0x80e   : > { %835 = vrot.lane.b32.xlu0 %v833_v32, %s1749_s9 }
 0x811   : > { %v737_v33 = vpop.permute.xlu2 %736 }
 0x812   : > { %v739_v34 = vmul.f32 %v737_v33, %v734_v19 }
 0x814   : > { %v750_v36 = vperm.slane %v739_v34, 0  ;;  %v756_v37 = vperm.slane %v739_v34, 1  ;;  %v763_v42 = vperm.slane %v739_v34, 2  ;;  %v770_v46 = vperm.slane %v739_v34, 3 }
 0x816   : > { %854 = vperm.xlu0 %1549, %v851_v14   ;;  %v751_v40 = vmul.f32 %v750_v36, %v748_v38  ;;  %v757_v41 = vmul.f32 %v756_v37, %v754_v35  ;;  %v771_v48 = vmul.f32 %v770_v46, %v768_v44 }
 0x818   : > { %v758_v45 = vadd.f32 %v757_v41, %v751_v40 }
 0x819   : > { %v761_v39 = vpop.permute.xlu2 %760 }
 0x81a   : > { %v764_v43 = vmul.f32 %v763_v42, %v761_v39 }
 0x81c   : > { %v765_v47 = vadd.f32 %v764_v43, %v758_v45 }
 0x81e   : > { %1557 = vset.pattern.permute.xlu0 %v1744_v10  ;;  %v772_v50 = vadd.f32 %v771_v48, %v765_v47 }
 0x81f   : > { %874 = vperm.xlu0 %1557, %v851_v14  }
 0x821   : > { %v803_v49 = vpop.permute.xlu2 %802 }
 0x822   : > { %v805_v10 = vadd.f32 %v803_v49, %v772_v50 }
 0x829   : > { %v847_v55 = vpop.permute.xlu2 %846 }
 0x832   : > { %v868_v3 = vpop.permute.xlu2 %867 }
 0x880   : > { %v836_v52 = vpop.permute.xlu0 %835 }
 0x881   : > { %v838_v53 = vadd.f32 %v836_v52, %v805_v10 }
 0x883   : > { %v843_v54 = vmul.f32 %v841_v51, %v838_v53 }
 0x885   : > { %v849_v57 = vadd.f32 %v847_v55, %v843_v54 }
 0x887   : > { %v850_v58 = vmax.f32 %v849_v57, 0.0 }
 0x888   : > { %v855_v59 = vpop.permute.xlu0 %854 }
 0x889   : > { %v857_v60 = vperm.slane %v850_v58, 0  ;;  %v863_v61 = vperm.slane %v850_v58, 1  ;;  %v870_v0 = vperm.slane %v850_v58, 2  ;;  %v877_v6 = vperm.slane %v850_v58, 3 }
 0x88b   : > { %v858_v62 = vmul.f32 %v857_v60, %v855_v59  ;;  %v864_v63 = vmul.f32 %v863_v61, %v861_v56  ;;  %v871_v5 = vmul.f32 %v870_v0, %v868_v3 }
 0x88d   : > { %v865_v4 = vadd.f32 %v864_v63, %v858_v62 }
 0x88f   : > { %v872_v12 = vadd.f32 %v871_v5, %v865_v4 }
 0x891   : > { %v875_v11 = vpop.permute.xlu0 %874 }
 0x892   : > { %v878_v13 = vmul.f32 %v877_v6, %v875_v11 }
 0x894   : > { %v879_v15 = vadd.f32 %v878_v13, %v872_v12 }
 0x896   : > { %881 = vrot.lane.b32.xlu1 %v879_v15, %s1750_s10  ;;  %v888_v16 = vmul.f32 %v879_v15, %v879_v15 }
 0x898   : > { %890 = vrot.lane.b32.xlu2 %v888_v16, %s1750_s10 }
 0x8f2   : > { %v891_v17 = vpop.permute.xlu2 %890 }
 0x8f3   : > { %v893_v14 = vsel %vm884_vm7, %v891_v17, 0.0 }
 0x8f4   : > { %894 = vadd.xlane.f32.xlu2 %v893_v14 }
 0x908   : > { %v882_v18 = vpop.permute.xlu1 %881 }
 0x909   : > { %v885_v19 = vsel %vm884_vm7, %v882_v18, 0.0 }
 0x90a   : > { %886 = vadd.xlane.f32.xlu1 %v885_v19 }
 0x967   : > { %v895_v21 = vpop.xlane.xlu2 %894 }
 0x97d   : > { %v887_v22 = vpop.xlane.xlu1 %886 }
 0x97e   : > { %v898_v23 = vsel %vm897_vm8, %v887_v22, %v895_v21 }
 0x97f   : > { %v899_v24 = vadd.f32 %v898_v23, %v896_v20 }
 0x981   : > { %901 = vst.msk [vmem:[#allocation4] sm:$0xff] %vm900_vm9, %v899_v24 }
 0x982 PF: > { %p1405_p11 = scmp.ne.s32.totalorder %s1711_s21, 3 }
 0x983   : > { %s1751_s11 = smov (!%p1405_p11), 1   ;;  %s1754_s21 = smov (!%p1405_p11), 127  }
 0x984   : > { %905 = sbr.rel (%p1405_p11) target bundleno = 3461 (0xd85), region = 72  ;;  %s1755_s12 = smov (!%p1405_p11), 5  }
 0x985   : > { %s1758_s13 = smov (!%p1405_p11), 122   ;;  %s1759_s14 = smov (!%p1405_p11), 3  }
 0x986   : > { %s1760_s15 = smov (!%p1405_p11), 32   ;;  %s1761_s16 = smov (!%p1405_p11), 7  }
 0x987   : > { %s1762_s27 = smov (!%p1405_p11), 124   ;;  %s1763_s28 = smov (!%p1405_p11), 126  }
 0x988   : > { %s1764_s29 = smov (!%p1405_p11), 31  }
 0x989   : > { %v1008_v25 = vld [vmem:[#allocation2] sm:$0xf]  ;;  %v940_v26 = vld [vmem:[#allocation5] sm:$0xff]  ;;  %v974_v30 = vld [vmem:[#allocation3] sm:$0xf]  ;;  %v1752_v32 = vmov 1  }
 0x98a   : > { %v1009_v27 = vmul.f32 0.03125, %v1008_v25  ;;  %v1967_v28 = vmul.f32 0.03125, %v940_v26  ;;  %v1973_v31 = vmul.f32 0.03125, %v974_v30  ;;  %1563 = vset.pattern.permute.xlu1 %v1752_v32  ;;  %v1753_v33 = vmov 0   ;;  %v1038_v39 = vld [vmem:[#allocation9] sm:$0xf] }
 0x98b   : > { %1562 = vset.pattern.permute.xlu0 %v1753_v33  ;;  %v1756_v55 = vmov 2   ;;  %v906_v59 = vld [vmem:[#allocation4] sm:$0xff]  ;;  %v1757_v62 = vmov 3   ;;  %vm1083_vm6 = vcmask 1047808   ;;  %vm1292_vm7 = vcmask 261120  }
 0x98c   : > { %v1010_v29 = vmul.f32 %v1009_v27, %v1009_v27  ;;  %v942_v9 = vmul.f32 %v1967_v28, %v1967_v28  ;;  %v976_v34 = vmul.f32 %v1973_v31, %v1973_v31  ;;  %1564 = vset.pattern.permute.xlu2 %v1756_v55  ;;  %v1985_v60 = vmul.f32 0.03125, %v906_v59 }
 0x98e   : > { %1012 = vrot.lane.b32.xlu0 %v1010_v29, %s1751_s11  ;;  %944 = vrot.lane.b32.xlu1 %v942_v9, %s1751_s11  ;;  %v908_v61 = vmul.f32 %v1985_v60, %v1985_v60 }
 0x996   : > { %978 = vrot.lane.b32.xlu1 %v976_v34, %s1751_s11  ;;  %v1050_v34 = vperm.slane %v1860_v1, 1 }
 0x99e   : > { %1047 = vperm.xlu1 %1563, %v1038_v39  }
 0xa00   : > { %v1013_v35 = vpop.permute.xlu0 %1012  ;;  %v945_v36 = vpop.permute.xlu1 %944 }
 0xa01   : > { %v1015_v37 = vsub.f32 %v1009_v27, %v1013_v35  ;;  %v947_v38 = vsub.f32 %v1967_v28, %v945_v36  ;;  %v1044_v35 = vperm.slane %v1860_v1, 0 }
 0xa03   : > { %v1016_v40 = vadd.f32 1e-05, %v1015_v37  ;;  %v948_v41 = vadd.f32 1e-05, %v947_v38 }
 0xa05   : > { %1589 = vrsqrt.f32 %v1016_v40  ;;  %vm955_vm10 = vweird.f32 %v948_v41  ;;  %vm1023_vm13 = vweird.f32 %v1016_v40 }
 0xa06   : > { %1591 = vrsqrt.f32 %v948_v41 }
 0xa08   : > { %v979_v63 = vpop.permute.xlu1 %978 }
 0xa09   : > { %v981_v0 = vsub.f32 %v1973_v31, %v979_v63  ;;  %v1082_v63 = vld [vmem:[%s2128_s2 + $0x8] sm:$0xf] }
 0xa0b   : > { %v1590_v42 = vpop.eup %1589  ;;  %v982_v3 = vadd.f32 1e-05, %v981_v0 }
 0xa0c   : > { %v1592_v43 = vpop.eup %1591  ;;  %v1018_v44 = vmul.f32 %v1590_v42, %v1016_v40  ;;  %vm1024_vm12 = vweird.f32 %v1590_v42 }
 0xa0d   : > { %v950_v45 = vmul.f32 %v1592_v43, %v948_v41  ;;  %vm956_vm11 = vweird.f32 %v1592_v43  ;;  %vm1025_vm15 = vmor %vm1023_vm13, %vm1024_vm12  ;;  %1593 = vrsqrt.f32 %v982_v3  ;;  %vm989_vm0 = vweird.f32 %v982_v3 }
 0xa0e   : > { %v1019_v46 = vmul.f32 %v1590_v42, %v1018_v44  ;;  %vm957_vm14 = vmor %vm955_vm10, %vm956_vm11 }
 0xa0f   : > { %v951_v47 = vmul.f32 %v1592_v43, %v950_v45 }
 0xa10   : > { %v1020_v48 = vmul.f32 0.5, %v1019_v46  ;;  %v1048_v11 = vpop.permute.xlu1 %1047 }
 0xa11   : > { %v952_v49 = vmul.f32 0.5, %v951_v47  ;;  %v1051_v37 = vmul.f32 %v1050_v34, %v1048_v11  ;;  %v1246_v11 = vld [vmem:[%s2130_s4] sm:$0xff] }
 0xa12   : > { %v1021_v50 = vsub.f32 1.5, %v1020_v48 }
 0xa13   : > { %v953_v10 = vsub.f32 1.5, %v952_v49  ;;  %v1594_v4 = vpop.eup %1593 }
 0xa14   : > { %v1022_v51 = vmul.f32 %v1590_v42, %v1021_v50  ;;  %v984_v5 = vmul.f32 %v1594_v4, %v982_v3  ;;  %vm990_vm1 = vweird.f32 %v1594_v4 }
 0xa15   : > { %v954_v52 = vmul.f32 %v1592_v43, %v953_v10  ;;  %vm991_vm2 = vmor %vm989_vm0, %vm990_vm1 }
 0xa16   : > { %v1026_v53 = vsel %vm1025_vm15, %v1590_v42, %v1022_v51  ;;  %v985_v6 = vmul.f32 %v1594_v4, %v984_v5  ;;  %v1064_v42 = vperm.slane %v1860_v1, 3 }
 0xa17   : > { %1028 = vrot.lane.b32.xlu0 %v1026_v53, %s1754_s21  ;;  %v958_v54 = vsel %vm957_vm14, %v1592_v43, %v954_v52  ;;  %v2022_v53 = vld [vmem:[%s2128_s2] sm:$0xf]  ;;  %s1767_s21 = smov 30  }
 0xa18   : > { %960 = vrot.lane.b32.xlu1 %v958_v54, %s1755_s12  ;;  %v986_v12 = vmul.f32 0.5, %v985_v6  ;;  %v1081_v54 = vld [vmem:[%s2128_s2 + $0x4] sm:$0xf] }
 0xa1a   : > { %v987_v13 = vsub.f32 1.5, %v986_v12 }
 0xa1c   : > { %v988_v17 = vmul.f32 %v1594_v4, %v987_v13 }
 0xa1e   : > { %v992_v14 = vsel %vm991_vm2, %v1594_v4, %v988_v17 }
 0xa1f   : > { %1041 = vperm.xlu0 %1562, %v1038_v39  }
 0xa89   : > { %v1029_v57 = vpop.permute.xlu0 %1028 }
 0xa8a   : > { %v1031_v58 = vmul.f32 %v1029_v57, %v1865_v2  ;;  %v961_v18 = vpop.permute.xlu1 %960 }
 0xa8b   : > { %v1997_v19 = vmul.f32 %v961_v18, %v1865_v2 }
 0xa8c   : > { %1069 = vperm.xlu0 %1562, %v1031_v58   ;;  %v1032_v56 = vmul.f32 %v1031_v58, %v1009_v27 }
 0xa8e   : > { %1034 = vrot.lane.b32.xlu2 %v1032_v56, %s1751_s11 }
 0xa91   : > { %v1042_v36 = vpop.permute.xlu0 %1041 }
 0xa92   : > { %v1045_v38 = vmul.f32 %v1044_v35, %v1042_v36 }
 0xa94   : > { %1567 = vset.pattern.permute.xlu0 %v1752_v32  ;;  %v1052_v40 = vadd.f32 %v1051_v37, %v1045_v38 }
 0xa96   : > { %910 = vrot.lane.b32.xlu2 %v908_v61, %s1751_s11 }
 0xa9e   : > { %1054 = vperm.xlu2 %1564, %v1038_v39  }
 0xaa6   : > { %1565 = vset.pattern.permute.xlu2 %v1757_v62 }
 0xaa7   : > { %1061 = vperm.xlu2 %1565, %v1038_v39   ;;  %v1057_v39 = vperm.slane %v1860_v1, 2 }
 0xaaf   : > { %1566 = vset.pattern.permute.xlu2 %v1753_v33 }
 0xab0   : > { %994 = vrot.lane.b32.xlu2 %v992_v14, %s1751_s11 }
 0xae8   : > { %v1035_v15 = vpop.permute.xlu2 %1034 }
 0xae9   : > { %v1037_v16 = vsub.f32 %v1865_v2, %v1035_v15 }
 0xaeb   : > { %1075 = vperm.xlu1 %1563, %v1037_v16  }
 0xaf0   : > { %v911_v20 = vpop.permute.xlu2 %910 }
 0xaf1   : > { %v913_v21 = vsub.f32 %v1985_v60, %v911_v20 }
 0xaf3   : > { %v914_v22 = vadd.f32 1e-05, %v913_v21  ;;  %965 = vrot.lane.b32.xlu1 %v1997_v19, %s1758_s13 }
 0xaf4   : > { %1568 = vset.pattern.permute.xlu1 %v1756_v55 }
 0xaf5   : > { %1595 = vrsqrt.f32 %v914_v22  ;;  %vm921_vm4 = vweird.f32 %v914_v22 }
 0xaf8   : > { %v1055_v30 = vpop.permute.xlu2 %1054 }
 0xaf9   : > { %v1058_v41 = vmul.f32 %v1057_v39, %v1055_v30 }
 0xafb   : > { %v1596_v23 = vpop.eup %1595  ;;  %v1059_v44 = vadd.f32 %v1058_v41, %v1052_v40 }
 0xafc   : > { %v916_v24 = vmul.f32 %v1596_v23, %v914_v22  ;;  %vm922_vm3 = vweird.f32 %v1596_v23  ;;  %v1765_v22 = vmov 7  }
 0xafd   : > { %vm923_vm5 = vmor %vm921_vm4, %vm922_vm3 }
 0xafe   : > { %v917_v25 = vmul.f32 %v1596_v23, %v916_v24  ;;  %v1070_v47 = vpop.permute.xlu0 %1069 }
 0xb00   : > { %v918_v26 = vmul.f32 0.5, %v917_v25 }
 0xb01   : > { %v1062_v43 = vpop.permute.xlu2 %1061 }
 0xb02   : > { %v919_v27 = vsub.f32 1.5, %v918_v26  ;;  %v1065_v45 = vmul.f32 %v1064_v42, %v1062_v43 }
 0xb04   : > { %v920_v29 = vmul.f32 %v1596_v23, %v919_v27  ;;  %v1066_v46 = vadd.f32 %v1065_v45, %v1059_v44  ;;  %v1206_v27 = vld [vmem:[%s2129_s3] sm:$0xff] }
 0xb06   : > { %v924_v9 = vsel %vm923_vm5, %v1596_v23, %v920_v29  ;;  %v1072_v48 = vmul.f32 %v1070_v47, %v1066_v46  ;;  %v1766_v23 = vmov 6  }
 0xb07   : > { %926 = vrot.lane.b32.xlu0 %v924_v9, %s1759_s14 }
 0xb5d   : > { %v1076_v49 = vpop.permute.xlu1 %1075 }
 0xb5e   : > { %v1078_v50 = vadd.f32 %v1076_v49, %v1072_v48 }
 0xb60   : > { %v2015_v10 = vmax.f32 %v1078_v50, 0.0 }
 0xb62   : > { %1084 = vrot.lane.b32.xlu2 %v2015_v10, %s1760_s15  ;;  %v1139_v36 = vperm.slane %v2015_v10, 1  ;;  %v1146_v40 = vperm.slane %v2015_v10, 2  ;;  %v1153_v45 = vperm.slane %v2015_v10, 3 }
 0xb65   : > { %v966_v51 = vpop.permute.xlu1 %965 }
 0xb66   : > { %v968_v52 = vmul.f32 %v966_v51, %v1967_v28  ;;  %v995_v28 = vpop.permute.xlu2 %994 }
 0xb67   : > { %v2033_v59 = vmul.f32 %v995_v28, %v1865_v2 }
 0xb6a   : > { %970 = vrot.lane.b32.xlu2 %v968_v52, %s1761_s16 }
 0xb72   : > { %1102 = vperm.xlu2 %1566, %v2022_v53  }
 0xb79   : > { %v927_v57 = vpop.permute.xlu0 %926 }
 0xb7a   : > { %v2029_v58 = vmul.f32 %v927_v57, %v1865_v2  ;;  %1130 = vperm.xlu2 %1566, %v1081_v54  }
 0xb7c   : > { %931 = vrot.lane.b32.xlu0 %v2029_v58, %s1762_s27 }
 0xb82   : > { %1570 = vset.pattern.permute.xlu2 %v1756_v55 }
 0xb83   : > { %1143 = vperm.xlu2 %1570, %v1081_v54  }
 0xb84   : > { %999 = vrot.lane.b32.xlu0 %v2033_v59, %s1763_s28 }
 0xb8b   : > { %1572 = vset.pattern.permute.xlu2 %v1757_v62 }
 0xb8c   : > { %1091 = vrot.lane.b32.xlu0 %v1867_v7, %s1764_s29 }
 0xb94   : > { %1108 = vperm.xlu0 %1567, %v2022_v53  }
 0xb9c   : > { %1571 = vset.pattern.permute.xlu0 %v1753_v33 }
 0xb9d   : > { %1163 = vperm.xlu0 %1571, %v1082_v63  }
 0xba5   : > { %1249 = vperm.xlu0 %1571, %v1246_v11  }
 0xbad   : > { %1576 = vset.pattern.permute.xlu0 %v1757_v62 }
 0xbae   : > { %1266 = vperm.xlu0 %1576, %v1246_v11  }
 0xbb6   : > { %1582 = vset.pattern.permute.xlu0 %v1753_v33 }
 0xbbc   : > { %v1085_v56 = vpop.permute.xlu2 %1084 }
 0xbbd   : > { %v1086_v61 = vsel %vm1083_vm6, %v1085_v56, %v2015_v10 }
 0xbbe   : > { %1087 = vrot.lane.b32.xlu2 %v1086_v61, %s1760_s15 }
 0xbc4   : > { %v971_v3 = vpop.permute.xlu2 %970 }
 0xbc5   : > { %v973_v17 = vsub.f32 %v1865_v2, %v971_v3 }
 0xbc6   : > { %1150 = vperm.xlu2 %1572, %v1081_v54  }
 0xbcc   : > { %v1103_v6 = vpop.permute.xlu2 %1102 }
 0xbce   : > { %1183 = vperm.xlu2 %1572, %v1082_v63  }
 0xbd4   : > { %v1131_v12 = vpop.permute.xlu2 %1130 }
 0xbd6   : > { %1575 = vset.pattern.permute.xlu2 %v1756_v55 }
 0xbd7   : > { %1260 = vperm.xlu2 %1575, %v1246_v11  }
 0xbdf   : > { %1578 = vset.pattern.permute.xlu2 %v1765_v22 }
 0xbe0   : > { %1278 = vperm.xlu2 %1578, %v973_v17  }
 0xbe8   : > { %1581 = vset.pattern.permute.xlu2 %v1757_v62 }
 0xbee   : > { %v932_v7 = vpop.permute.xlu0 %931 }
 0xbef   : > { %v934_v0 = vmul.f32 %v932_v7, %v1985_v60  ;;  %v1144_v60 = vpop.permute.xlu2 %1143 }
 0xbf0   : > { %v1147_v44 = vmul.f32 %v1146_v40, %v1144_v60 }
 0xbf1   : > { %936 = vrot.lane.b32.xlu1 %v934_v0, %s1755_s12  ;;  %s1770_s12 = smov 97  }
 0xbf6   : > { %v1000_v4 = vpop.permute.xlu0 %999 }
 0xbf7   : > { %v1002_v5 = vmul.f32 %v1000_v4, %v1973_v31 }
 0xbf9   : > { %1004 = vrot.lane.b32.xlu1 %v1002_v5, %s1759_s14 }
 0xbfe   : > { %v1092_v31 = vpop.permute.xlu0 %1091 }
 0xc01   : > { %1096 = vrot.lane.b32.xlu1 %v1869_v8, %s1751_s11 }
 0xc06   : > { %v1109_v16 = vpop.permute.xlu0 %1108 }
 0xc09   : > { %1115 = vperm.xlu1 %1568, %v2022_v53  }
 0xc0f   : > { %v1164_v51 = vpop.permute.xlu0 %1163 }
 0xc11   : > { %1569 = vset.pattern.permute.xlu1 %v1752_v32 }
 0xc12   : > { %1136 = vperm.xlu1 %1569, %v1081_v54  }
 0xc17   : > { %v1250_v7 = vpop.permute.xlu0 %1249 }
 0xc18   : > { %v1088_v13 = vpop.permute.xlu2 %1087  ;;  %v1252_v60 = vmul.f32 %v1250_v7, %v1044_v35 }
 0xc19   : > { %v1089_v15 = vsel %vm1083_vm6, %v1088_v13, %v2015_v10 }
 0xc1a   : > { %v2063_v8 = vmul.f32 %v1092_v31, %v1089_v15  ;;  %1169 = vperm.xlu1 %1569, %v1082_v63  }
 0xc1c   : > { %v1105_v14 = vperm.slane %v2063_v8, 0  ;;  %v1111_v18 = vperm.slane %v2063_v8, 1  ;;  %v1125_v1 = vperm.slane %v2063_v8, 3 }
 0xc1e   : > { %v1106_v20 = vmul.f32 %v1105_v14, %v1103_v6  ;;  %v1112_v21 = vmul.f32 %v1111_v18, %v1109_v16 }
 0xc20   : > { %v1113_v33 = vadd.f32 %v1112_v21, %v1106_v20  ;;  %v1151_v43 = vpop.permute.xlu2 %1150 }
 0xc21   : > { %v1154_v47 = vmul.f32 %v1153_v45, %v1151_v43 }
 0xc22   : > { %1573 = vset.pattern.permute.xlu1 %v1756_v55 }
 0xc23   : > { %1176 = vperm.xlu1 %1573, %v1082_v63  }
 0xc28   : > { %v1184_v61 = vpop.permute.xlu2 %1183 }
 0xc2b   : > { %1574 = vset.pattern.permute.xlu1 %v1752_v32 }
 0xc2c   : > { %1254 = vperm.xlu1 %1574, %v1246_v11  }
 0xc31   : > { %v1261_v6 = vpop.permute.xlu2 %1260 }
 0xc32   : > { %v1263_v31 = vmul.f32 %v1261_v6, %v1057_v39 }
 0xc34   : > { %1577 = vset.pattern.permute.xlu1 %v1766_v23 }
 0xc35   : > { %1272 = vperm.xlu1 %1577, %v1997_v19   ;;  %v1118_v19 = vperm.slane %v2063_v8, 2 }
 0xc3a   : > { %v1279_v35 = vpop.permute.xlu2 %1278 }
 0xc3d   : > { %1579 = vset.pattern.permute.xlu1 %v1757_v62 }
 0xc3e   : > { %1122 = vperm.xlu1 %1579, %v2022_v53  }
 0xc46   : > { %1580 = vset.pattern.permute.xlu1 %v1756_v55 }
 0xc47   : > { %1195 = vperm.xlu1 %1580, %v2033_v59  }
 0xc4f   : > { %1583 = vset.pattern.permute.xlu1 %v1752_v32  ;;  %v1133_v32 = vperm.slane %v2015_v10, 0 }
 0xc50   : > { %1215 = vperm.xlu1 %1583, %v1206_v27  }
 0xc51   : > { %v1134_v38 = vmul.f32 %v1133_v32, %v1131_v12  ;;  %v1267_v12 = vpop.permute.xlu0 %1266 }
 0xc52   : > { %v1269_v16 = vmul.f32 %v1267_v12, %v1064_v42 }
 0xc58   : > { %1585 = vset.pattern.permute.xlu1 %v1757_v62 }
 0xc59   : > { %1229 = vperm.xlu1 %1585, %v1206_v27  }
 0xc63   : > { %v2078_v24 = vpop.permute.xlu1 %936 }
 0xc64   : > { %v939_v39 = vsub.f32 %v1865_v2, %v2078_v24 }
 0xc6b   : > { %v1005_v25 = vpop.permute.xlu1 %1004 }
 0xc6c   : > { %v1007_v57 = vsub.f32 %v1865_v2, %v1005_v25 }
 0xc73   : > { %v1097_v26 = vpop.permute.xlu1 %1096 }
 0xc74   : > { %v1099_v50 = vmul.f32 %v1097_v26, %v1089_v15 }
 0xc76   : > { %v1166_v52 = vperm.slane %v1099_v50, 0  ;;  %v1172_v53 = vperm.slane %v1099_v50, 1  ;;  %v1186_v59 = vperm.slane %v1099_v50, 3  ;;  %v1179_v56 = vperm.slane %v1099_v50, 2 }
 0xc78   : > { %v1167_v28 = vmul.f32 %v1166_v52, %v1164_v51  ;;  %v1187_v3 = vmul.f32 %v1186_v59, %v1184_v61 }
 0xc7b   : > { %v1116_v29 = vpop.permute.xlu1 %1115 }
 0xc7c   : > { %v1119_v9 = vmul.f32 %v1118_v19, %v1116_v29 }
 0xc7e   : > { %v2084_v30 = vadd.f32 %v1119_v9, %v1113_v33  ;;  %v1769_v33 = vmov 5  }
 0xc84   : > { %v1137_v37 = vpop.permute.xlu1 %1136 }
 0xc85   : > { %v1140_v41 = vmul.f32 %v1139_v36, %v1137_v37 }
 0xc87   : > { %v1141_v46 = vadd.f32 %v1140_v41, %v1134_v38 }
 0xc89   : > { %v1148_v48 = vadd.f32 %v1147_v44, %v1141_v46 }
 0xc8b   : > { %v1155_v49 = vadd.f32 %v1154_v47, %v1148_v48 }
 0xc8c   : > { %v1170_v62 = vpop.permute.xlu1 %1169 }
 0xc8d   : > { %1157 = vrot.lane.b32.xlu2 %v1155_v49, %s1764_s29  ;;  %v1173_v54 = vmul.f32 %v1172_v53, %v1170_v62 }
 0xc8f   : > { %v1174_v10 = vadd.f32 %v1173_v54, %v1167_v28 }
 0xc95   : > { %v1177_v63 = vpop.permute.xlu1 %1176  ;;  %1201 = vperm.xlu2 %1581, %v1007_v57  }
 0xc96   : > { %v1180_v0 = vmul.f32 %v1179_v56, %v1177_v63 }
 0xc98   : > { %v1181_v4 = vadd.f32 %v1180_v0, %v1174_v10 }
 0xc9a   : > { %v1188_v5 = vadd.f32 %v1187_v3, %v1181_v4 }
 0xc9c   : > { %1190 = vrot.lane.b32.xlu0 %v1188_v5, %s1767_s21 }
 0xc9d   : > { %1584 = vset.pattern.permute.xlu2 %v1756_v55  ;;  %v1768_v55 = vmov 4  }
 0xc9e   : > { %v1255_v11 = vpop.permute.xlu1 %1254  ;;  %1222 = vperm.xlu2 %1584, %v1206_v27  }
 0xc9f   : > { %v1257_v13 = vmul.f32 %v1255_v11, %v1050_v34 }
 0xca1   : > { %v1258_v15 = vadd.f32 %v1257_v13, %v1252_v60 }
 0xca3   : > { %v1264_v17 = vadd.f32 %v1263_v31, %v1258_v15 }
 0xca4   : > { %1209 = vperm.xlu0 %1582, %v1206_v27  }
 0xca5   : > { %v1270_v14 = vadd.f32 %v1269_v16, %v1264_v17 }
 0xca6   : > { %1586 = vset.pattern.permute.xlu2 %v1768_v55 }
 0xca7   : > { %v1273_v18 = vpop.permute.xlu1 %1272  ;;  %1236 = vperm.xlu2 %1586, %v2029_v58  }
 0xca8   : > { %v1275_v20 = vmul.f32 %v1273_v18, %v1270_v14 }
 0xcaa   : > { %v1281_v21 = vadd.f32 %v1279_v35, %v1275_v20 }
 0xcac   : > { %1587 = vset.pattern.permute.xlu0 %v1769_v33  ;;  %1283 = vrot.lane.b32.xlu1 %v1281_v21, %s1764_s29 }
 0xcad   : > { %1242 = vperm.xlu0 %1587, %v939_v39  }
 0xcb0   : > { %v1123_v34 = vpop.permute.xlu1 %1122 }
 0xcb1   : > { %v1126_v42 = vmul.f32 %v1125_v1, %v1123_v34 }
 0xcb3   : > { %v1127_v23 = vadd.f32 %v1126_v42, %v2084_v30 }
 0xcb5   : > { %1588 = vset.pattern.permute.xlu0 %v1765_v22 }
 0xcb9   : > { %v1196_v25 = vpop.permute.xlu1 %1195 }
 0xcc2   : > { %v1216_v2 = vpop.permute.xlu1 %1215 }
 0xccb   : > { %v1230_v44 = vpop.permute.xlu1 %1229 }
 0xce7   : > { %v1158_v58 = vpop.permute.xlu2 %1157 }
 0xce8   : > { %v1160_v26 = vadd.f32 %v1158_v58, %v1127_v23 }
 0xcef   : > { %v1202_v27 = vpop.permute.xlu2 %1201 }
 0xcf8   : > { %v1223_v36 = vpop.permute.xlu2 %1222 }
 0xd01   : > { %v1237_v49 = vpop.permute.xlu2 %1236 }
 0xd0e   : > { %v1191_v19 = vpop.permute.xlu0 %1190 }
 0xd0f   : > { %v1193_v29 = vadd.f32 %v1191_v19, %v1160_v26 }
 0xd11   : > { %v1198_v24 = vmul.f32 %v1196_v25, %v1193_v29 }
 0xd13   : > { %v1204_v9 = vadd.f32 %v1202_v27, %v1198_v24 }
 0xd15   : > { %v1205_v32 = vmax.f32 %v1204_v9, 0.0 }
 0xd16   : > { %v1210_v37 = vpop.permute.xlu0 %1209 }
 0xd17   : > { %v1212_v38 = vperm.slane %v1205_v32, 0  ;;  %v1218_v8 = vperm.slane %v1205_v32, 1  ;;  %v1225_v40 = vperm.slane %v1205_v32, 2  ;;  %v1232_v41 = vperm.slane %v1205_v32, 3 }
 0xd19   : > { %v1213_v43 = vmul.f32 %v1212_v38, %v1210_v37  ;;  %v1219_v30 = vmul.f32 %v1218_v8, %v1216_v2  ;;  %v1226_v45 = vmul.f32 %v1225_v40, %v1223_v36  ;;  %v1233_v46 = vmul.f32 %v1232_v41, %v1230_v44 }
 0xd1b   : > { %v1220_v22 = vadd.f32 %v1219_v30, %v1213_v43 }
 0xd1d   : > { %v1227_v47 = vadd.f32 %v1226_v45, %v1220_v22 }
 0xd1e   : > { %v1284_v52 = vpop.permute.xlu1 %1283 }
 0xd1f   : > { %v1234_v48 = vadd.f32 %v1233_v46, %v1227_v47  ;;  %v1243_v62 = vpop.permute.xlu0 %1242 }
 0xd21   : > { %v1239_v50 = vmul.f32 %v1237_v49, %v1234_v48 }
 0xd23   : > { %v1245_v51 = vadd.f32 %v1243_v62, %v1239_v50 }
 0xd25   : > { %v1286_v53 = vadd.f32 %v1284_v52, %v1245_v51 }
 0xd27   : > { %v1287_v54 = vmax.f32 %v1286_v53, 0.0 }
 0xd29   : > { %1289 = vrot.lane.b32.xlu2 %v1287_v54, %s1770_s12 }
 0xd83   : > { %v1290_v57 = vpop.permute.xlu2 %1289 }
 0xd84   : > { %1293 = vst.msk [vmem:[#allocation11] sm:$0xff] %vm1292_vm7, %v1290_v57 }
 0xd85 PF: > { %p1438_p12 = scmp.eq.s32.totalorder %s1391_s24, 3  ;;  %s1311_s15 = sshll.u32 %s2132_s6, 4  ;;  %s1312_s15 = int_to_ptr.hbm [resolvable:$true] %s1311_s15 }
 0xd86   : > { %s1771_s16 = smov [#allocation11]  }
 0xd87   : > { %s1309_s17 = sshll.u32 %s1771_s16, 4  ;;  %s1310_s17 = int_to_ptr.vmem [resolvable:$true] %s1309_s17 }
 0xd88   : > { %1420 = dma.vmem_to_hbm [thread:$0]  (%p1438_p12), %s1310_s17, 128, %s1312_s15, [#allocation8]  }
 0xd89 PF: > { %p1439_p13 = scmp.ge.s32.totalorder %s1719_s23, 2  ;;  %p1440_p0 = scmp.eq.s32.totalorder %s1392_s25, 3 }
 0xd8b   : > { %p1431_p1 = pnand %p1440_p0, %p1439_p13 }
 0xd8d   : > { %p1432_p2 = pneg %p1431_p1 }
 0xd8f   : > { %1706 = dma.done.wait (%p1432_p2), [#allocation8], 128  }
 0xd90   : > { %1708 = vsyncadd (%p1432_p2), [#allocation8], 4294967168  ;;  %s21_s23 = sadd.s32 1, %s1719_s23   ;;  %s2135_s21 = smov %s1715_s22 }
 0xd91   : > { %p18_p3 = scmp.ge.s32.totalorder %s21_s23, 6   ;;  %s2136_s22 = smov %s2138_s26 }
 0xd93   :  { %20 = sbr.rel (!%p18_p3) target bundleno = 5 (0x5), region = 106 }
 0xd98   :  { %1330 = vsyncpa [#allocation7], 1 }
 0xd99   :  { %1332 = vsyncpa [#allocation7 + $0x1], 1 }
 0xd9a   :  { %1333 = vsyncpa [#allocation10], 1 }
 0xd9b   :  { %1334 = vsyncpa [#allocation8], 1 }
 0xd9c   :  { %1336 = vsyncpa [#allocation8 + $0x1], 1 }

</bundles_post_ra>
